<compile_context>
chip_gen: v5e
topology: v5e:2x2
jax: 0.10.0
libtpu: 0.0.40
codegen_flags: <defaults>
</compile_context>

<pallas_src>
import jax
import jax.numpy as jnp
from jax.experimental import pallas as pl
from jax.experimental.pallas import tpu as pltpu

_EPS = 1e-5        # InstanceNorm2d default eps
_SLOPE = 0.2       # LeakyReLU negative slope


# ----------------------------- Pallas kernels ------------------------------

def _make_block_kernel(L, Ws, inv_count, norm):
    """Fused Conv(4,2,1) [+ InstanceNorm2d] + LeakyReLU(0.2) for one image.

    x_ref  : (1, M, 4*C_in) bf16 — space-to-depth'd padded input, spatial
             flattened row-major; row r of the *output* accumulator maps to
             output pixel (r // Ws, r % Ws); rows with (r % Ws) == Ws-1 are
             junk (masked out and written as zeros).
    w_ref  : (4, 4*C_in, C_out) bf16 — one (4*C_in, C_out) matrix per tap.
    b_ref  : (1, C_out) f32
    m_ref  : (L, 1) f32 — 1.0 on real rows, 0.0 on junk rows.
    o_ref  : (1, L, C_out) bf16
    """
    offs = (0, 1, Ws, Ws + 1)   # taps (a, b) in {(0,0), (0,1), (1,0), (1,1)}

    def kernel(x_ref, w_ref, b_ref, m_ref, o_ref):
        acc = jnp.dot(x_ref[0, pl.ds(offs[0], L), :], w_ref[0],
                      preferred_element_type=jnp.float32)
        for t in range(1, 4):
            acc = acc + jnp.dot(x_ref[0, pl.ds(offs[t], L), :], w_ref[t],
                                preferred_element_type=jnp.float32)

        y = acc + b_ref[...]                       # (L, C_out) f32
        mask = m_ref[...]                          # (L, 1) f32

        if norm:
            # single-pass masked stats: var = E[y^2] - mean^2 (biased, eps=1e-5)
            ym = y * mask
            mean = jnp.sum(ym, axis=0, keepdims=True) * inv_count
            ex2 = jnp.sum(ym * ym, axis=0, keepdims=True) * inv_count
            var = ex2 - mean * mean
            y = (y - mean) * jax.lax.rsqrt(var + _EPS)

        y = jnp.where(y > 0, y, _SLOPE * y)        # LeakyReLU(0.2)
        # zero the junk rows so the stored junk column is valid zero padding
        o_ref[0] = (y * mask).astype(o_ref.dtype)

    return kernel


def _make_final_kernel(Hf, Wf):
    """Final Conv2d(512, 1, 4, stride=1), no bias — lane-reduction tap kernel.

    x_ref : (1, Hp, Wp, C) bf16 (fully padded input)
    w_ref : (16, 1, C) f32     (tap-major flattened weight)
    o_ref : (1, Hf, Wf) f32
    """
    def kernel(x_ref, w_ref, o_ref):
        acc = jnp.zeros((Hf, Wf), jnp.float32)
        for i in range(4):
            for j in range(4):
                tap = x_ref[0, pl.ds(i, Hf), pl.ds(j, Wf), :].astype(jnp.float32)
                acc = acc + jnp.sum(tap * w_ref[4 * i + j], axis=-1)
        o_ref[0] = acc
    return kernel


# ------------------------------ layer wrappers -------------------------------

def conv_block(xr, w, b, *, norm):
    """One discriminator block.

    xr : (N, Hr, Wr+1, C_in) bf16 NHWC; the last column is a zero column that
         acts as the conv's right-hand zero padding.
    w  : (C_out, C_in, 4, 4) f32 (PyTorch layout),  b : (C_out,) f32
    returns (N, Hr/2, Wr/2 + 1, C_out) bf16 in the same "zero junk column" form.
    """
    N, Hr, Wr1, C_in = xr.shape
    Wr = Wr1 - 1
    Ho, Wo = Hr // 2, Wr // 2
    Hs, Ws = Ho + 2, Wo + 1
    C_out = w.shape[0]

    # pad: top 1, bottom 3, left 1 (right pad is the existing zero column)
    xp = jnp.pad(xr, ((0, 0), (1, 3), (1, 0), (0, 0)))           # (N, 2*Hs, 2*Ws, C_in)

    # 2x2 space-to-depth into channels, then flatten spatial.  The reshapes are
    # free views; the transpose is the only real data movement.
    xs = xp.reshape(N, Hs, 2, Ws, 2, C_in)
    xs = jnp.transpose(xs, (0, 1, 3, 2, 4, 5))                    # (N, Hs, Ws, 2, 2, C)
    xs = xs.reshape(N, Hs * Ws, 4 * C_in).astype(jnp.bfloat16)    # (N, M, 4*C_in)

    # weights: (C_out, C_in, kh, kw) -> 4 taps of (4*C_in, C_out), bf16 for MXU
    wt = jnp.transpose(w, (2, 3, 1, 0))                           # (kh, kw, C_in, C_out)
    wk = jnp.stack(
        [wt[2 * a:2 * a + 2, 2 * b:2 * b + 2].reshape(4 * C_in, C_out)
         for a in (0, 1) for b in (0, 1)], axis=0).astype(jnp.bfloat16)
    b2 = b.reshape(1, C_out).astype(jnp.float32)

    L = Ho * Ws
    mask = (jnp.arange(L, dtype=jnp.int32) % Ws < Wo)
    mask = mask.astype(jnp.float32).reshape(L, 1)

    M = Hs * Ws
    K = 4 * C_in
    kernel = _make_block_kernel(L, Ws, 1.0 / float(Ho * Wo), norm)

    out = pl.pallas_call(
        kernel,
        out_shape=jax.ShapeDtypeStruct((N, L, C_out), jnp.bfloat16),
        grid=(N,),
        in_specs=[
            pl.BlockSpec((1, M, K), lambda n: (n, 0, 0)),
            pl.BlockSpec((4, K, C_out), lambda n: (0, 0, 0)),
            pl.BlockSpec((1, C_out), lambda n: (0, 0)),
            pl.BlockSpec((L, 1), lambda n: (0, 0)),
        ],
        out_specs=pl.BlockSpec((1, L, C_out), lambda n: (n, 0, 0)),
        compiler_params=pltpu.CompilerParams(
            dimension_semantics=("parallel",)),
    )(xs, wk, b2, mask)

    # free reshape back to spatial form (last column = zeros = next right pad)
    return out.reshape(N, Ho, Ws, C_out)


def final_conv(xr, w):
    """ZeroPad2d((1,0,1,0)) + Conv2d(512, 1, 4, padding=1, bias=False)."""
    N, Hr, Wr1, C = xr.shape
    Wr = Wr1 - 1
    Hf, Wf = Hr, Wr
    # combined padding: top 2, bottom 1, left 2, right 1 (right 1 = zero column)
    xp = jnp.pad(xr, ((0, 0), (2, 1), (2, 0), (0, 0)))            # (N, Hr+3, Wr+3, C)
    Hp, Wp = Hr + 3, Wr + 3

    wk = jnp.transpose(w[0], (1, 2, 0)).reshape(16, 1, C).astype(jnp.float32)

    out = pl.pallas_call(
        _make_final_kernel(Hf, Wf),
        out_shape=jax.ShapeDtypeStruct((N, Hf, Wf), jnp.float32),
        grid=(N,),
        in_specs=[
            pl.BlockSpec((1, Hp, Wp, C), lambda n: (n, 0, 0, 0)),
            pl.BlockSpec((16, 1, C), lambda n: (0, 0, 0)),
        ],
        out_specs=pl.BlockSpec((1, Hf, Wf), lambda n: (n, 0, 0)),
        compiler_params=pltpu.CompilerParams(
            dimension_semantics=("parallel",)),
    )(xp, wk)
    return out[:, None, :, :]                                     # NCHW (N, 1, Hf, Wf)


# ------------------------------- forward pass --------------------------------

def discriminator_forward(img, params):
    """img: (N, C_in, H, W) float32 -> (N, 1, H/16, W/16) PatchGAN output."""
    # NHWC, bf16, plus one zero column (doubles as the first conv's right pad)
    x = jnp.transpose(img, (0, 2, 3, 1)).astype(jnp.bfloat16)
    x = jnp.pad(x, ((0, 0), (0, 0), (0, 1), (0, 0)))

    for (w, b, norm) in params["blocks"]:
        x = conv_block(x, w, b, norm=norm)

    return final_conv(x, params["final_w"])


def init_params(key, in_channels=3):
    """Deterministic synthetic parameters with the module's shapes."""
    layer_defs = [
        (in_channels, 64, False),   # block 1: no normalization
        (64, 128, True),
        (128, 256, True),
        (256, 512, True),
    ]
    blocks = []
    for ci, co, norm in layer_defs:
        key, k1, k2 = jax.random.split(key, 3)
        w = jax.random.normal(k1, (co, ci, 4, 4), jnp.float32) * 0.05
        b = jax.random.normal(k2, (co,), jnp.float32) * 0.05
        blocks.append((w, b, norm))
    key, kf = jax.random.split(key)
    final_w = jax.random.normal(kf, (1, 512, 4, 4), jnp.float32) * 0.05
    return {"blocks": blocks, "final_w": final_w}


if __name__ == "__main__":
    key = jax.random.PRNGKey(0)
    kp, kx = jax.random.split(key)

    params = init_params(kp, in_channels=3)
    # small input consistent with the module: NCHW, 3 channels, 32x32 spatial
    img = jax.random.normal(kx, (2, 3, 32, 32), jnp.float32)

    out = discriminator_forward(img, params)
    out = jax.block_until_ready(out)

    assert out.shape == (2, 1, 2, 2), out.shape
    assert jnp.all(jnp.isfinite(out))
    print("KERNEL_OK")
</pallas_src>

<mosaic_0001>
module attributes {stable_mosaic.version = 11 : i64} {
  func.func @kernel(%arg0: i32, %arg1: memref<1x306x12xbf16, #tpu.memory_space<vmem>>, %arg2: memref<4x12x64xbf16, #tpu.memory_space<vmem>>, %arg3: memref<1x64xf32, #tpu.memory_space<vmem>>, %arg4: memref<272x1xf32, #tpu.memory_space<vmem>>, %arg5: memref<1x272x64xbf16, #tpu.memory_space<vmem>>) attributes {dimension_semantics = [#tpu.dimension_semantics<parallel>], iteration_bounds = array<i64: 2>, scalar_prefetch = 0 : i64, scratch_operands = 0 : i64, tpu.core_type = #tpu.core_type<tc>, window_params = [{transform_indices = @transform_0, window_bounds = array<i64: 1, 306, 12>}, {pipeline_mode = #tpu.pipeline_mode<synchronous>, transform_indices = @transform_1, window_bounds = array<i64: 4, 12, 64>}, {pipeline_mode = #tpu.pipeline_mode<synchronous>, transform_indices = @transform_2, window_bounds = array<i64: 1, 64>}, {pipeline_mode = #tpu.pipeline_mode<synchronous>, transform_indices = @transform_3, window_bounds = array<i64: 272, 1>}, {transform_indices = @transform_4, window_bounds = array<i64: 1, 272, 64>}]} {
    %c0 = arith.constant 0 : index
    %c0_0 = arith.constant 0 : index
    %c0_1 = arith.constant 0 : index
    %0 = vector.load %arg1[%c0, %c0_0, %c0_1] : memref<1x306x12xbf16, #tpu.memory_space<vmem>>, vector<1x272x12xbf16>
    %1 = vector.shape_cast %0 : vector<1x272x12xbf16> to vector<272x12xbf16>
    %c0_2 = arith.constant 0 : index
    %c0_3 = arith.constant 0 : index
    %c0_4 = arith.constant 0 : index
    %2 = vector.load %arg2[%c0_2, %c0_3, %c0_4] : memref<4x12x64xbf16, #tpu.memory_space<vmem>>, vector<1x12x64xbf16>
    %3 = vector.shape_cast %2 : vector<1x12x64xbf16> to vector<12x64xbf16>
    %cst = arith.constant dense<0.000000e+00> : vector<272x64xf32>
    %4 = tpu.matmul %1, %3, %cst {dimension_numbers = #tpu.dot_dimension_numbers<[1], [0], [0], [1], [0, 0, 1, 1], [], []>} : vector<272x12xbf16>, vector<12x64xbf16>, vector<272x64xf32> -> vector<272x64xf32>
    %c0_5 = arith.constant 0 : index
    %c1 = arith.constant 1 : index
    %c0_6 = arith.constant 0 : index
    %5 = vector.load %arg1[%c0_5, %c1, %c0_6] : memref<1x306x12xbf16, #tpu.memory_space<vmem>>, vector<1x272x12xbf16>
    %6 = vector.shape_cast %5 : vector<1x272x12xbf16> to vector<272x12xbf16>
    %c1_7 = arith.constant 1 : index
    %c0_8 = arith.constant 0 : index
    %c0_9 = arith.constant 0 : index
    %7 = vector.load %arg2[%c1_7, %c0_8, %c0_9] : memref<4x12x64xbf16, #tpu.memory_space<vmem>>, vector<1x12x64xbf16>
    %8 = vector.shape_cast %7 : vector<1x12x64xbf16> to vector<12x64xbf16>
    %cst_10 = arith.constant dense<0.000000e+00> : vector<272x64xf32>
    %9 = tpu.matmul %6, %8, %cst_10 {dimension_numbers = #tpu.dot_dimension_numbers<[1], [0], [0], [1], [0, 0, 1, 1], [], []>} : vector<272x12xbf16>, vector<12x64xbf16>, vector<272x64xf32> -> vector<272x64xf32>
    %10 = arith.addf %4, %9 : vector<272x64xf32>
    %c0_11 = arith.constant 0 : index
    %c17 = arith.constant 17 : index
    %c0_12 = arith.constant 0 : index
    %11 = vector.load %arg1[%c0_11, %c17, %c0_12] : memref<1x306x12xbf16, #tpu.memory_space<vmem>>, vector<1x272x12xbf16>
    %12 = vector.shape_cast %11 : vector<1x272x12xbf16> to vector<272x12xbf16>
    %c2 = arith.constant 2 : index
    %c0_13 = arith.constant 0 : index
    %c0_14 = arith.constant 0 : index
    %13 = vector.load %arg2[%c2, %c0_13, %c0_14] : memref<4x12x64xbf16, #tpu.memory_space<vmem>>, vector<1x12x64xbf16>
    %14 = vector.shape_cast %13 : vector<1x12x64xbf16> to vector<12x64xbf16>
    %cst_15 = arith.constant dense<0.000000e+00> : vector<272x64xf32>
    %15 = tpu.matmul %12, %14, %cst_15 {dimension_numbers = #tpu.dot_dimension_numbers<[1], [0], [0], [1], [0, 0, 1, 1], [], []>} : vector<272x12xbf16>, vector<12x64xbf16>, vector<272x64xf32> -> vector<272x64xf32>
    %16 = arith.addf %10, %15 : vector<272x64xf32>
    %c0_16 = arith.constant 0 : index
    %c18 = arith.constant 18 : index
    %c0_17 = arith.constant 0 : index
    %17 = vector.load %arg1[%c0_16, %c18, %c0_17] : memref<1x306x12xbf16, #tpu.memory_space<vmem>>, vector<1x272x12xbf16>
    %18 = vector.shape_cast %17 : vector<1x272x12xbf16> to vector<272x12xbf16>
    %c3 = arith.constant 3 : index
    %c0_18 = arith.constant 0 : index
    %c0_19 = arith.constant 0 : index
    %19 = vector.load %arg2[%c3, %c0_18, %c0_19] : memref<4x12x64xbf16, #tpu.memory_space<vmem>>, vector<1x12x64xbf16>
    %20 = vector.shape_cast %19 : vector<1x12x64xbf16> to vector<12x64xbf16>
    %cst_20 = arith.constant dense<0.000000e+00> : vector<272x64xf32>
    %21 = tpu.matmul %18, %20, %cst_20 {dimension_numbers = #tpu.dot_dimension_numbers<[1], [0], [0], [1], [0, 0, 1, 1], [], []>} : vector<272x12xbf16>, vector<12x64xbf16>, vector<272x64xf32> -> vector<272x64xf32>
    %22 = arith.addf %16, %21 : vector<272x64xf32>
    %c0_21 = arith.constant 0 : index
    %c0_22 = arith.constant 0 : index
    %23 = vector.load %arg3[%c0_21, %c0_22] : memref<1x64xf32, #tpu.memory_space<vmem>>, vector<1x64xf32>
    %24 = vector.broadcast %23 : vector<1x64xf32> to vector<272x64xf32>
    %25 = arith.addf %22, %24 : vector<272x64xf32>
    %c0_23 = arith.constant 0 : index
    %c0_24 = arith.constant 0 : index
    %26 = vector.load %arg4[%c0_23, %c0_24] : memref<272x1xf32, #tpu.memory_space<vmem>>, vector<272x1xf32>
    %cst_25 = arith.constant 0.000000e+00 : f32
    %27 = vector.broadcast %cst_25 : f32 to vector<272x64xf32>
    %28 = arith.cmpf ogt, %25, %27 : vector<272x64xf32>
    %cst_26 = arith.constant 2.000000e-01 : f32
    %29 = vector.broadcast %cst_26 : f32 to vector<272x64xf32>
    %30 = arith.mulf %29, %25 : vector<272x64xf32>
    %31 = arith.select %28, %25, %30 : vector<272x64xi1>, vector<272x64xf32>
    %32 = vector.broadcast %26 : vector<272x1xf32> to vector<272x64xf32>
    %33 = arith.mulf %31, %32 : vector<272x64xf32>
    %34 = arith.truncf %33 : vector<272x64xf32> to vector<272x64xbf16>
    %c0_27 = arith.constant 0 : index
    %c0_28 = arith.constant 0 : index
    %c0_29 = arith.constant 0 : index
    %35 = vector.load %arg5[%c0_27, %c0_28, %c0_29] : memref<1x272x64xbf16, #tpu.memory_space<vmem>>, vector<1x272x64xbf16>
    %36 = vector.shape_cast %35 : vector<1x272x64xbf16> to vector<272x64xbf16>
    %37 = vector.shape_cast %34 : vector<272x64xbf16> to vector<1x272x64xbf16>
    tpu.vector_store %arg5[%c0_27, %c0_28, %c0_29], %37 {strides = array<i32>} : memref<1x272x64xbf16, #tpu.memory_space<vmem>>, vector<1x272x64xbf16>,
    return
  }
  func.func @transform_0(%arg0: i32) -> (i32, i32, i32) {
    %c0_i32 = arith.constant 0 : i32
    %c0_i32_0 = arith.constant 0 : i32
    %c0_i32_1 = arith.constant 0 : i32
    return %arg0, %c0_i32, %c0_i32_0 : i32, i32, i32
  }
  func.func @transform_1(%arg0: i32) -> (i32, i32, i32) {
    %c0_i32 = arith.constant 0 : i32
    %c0_i32_0 = arith.constant 0 : i32
    %c0_i32_1 = arith.constant 0 : i32
    %c0_i32_2 = arith.constant 0 : i32
    return %c0_i32, %c0_i32_0, %c0_i32_1 : i32, i32, i32
  }
  func.func @transform_2(%arg0: i32) -> (i32, i32) {
    %c0_i32 = arith.constant 0 : i32
    %c0_i32_0 = arith.constant 0 : i32
    %c0_i32_1 = arith.constant 0 : i32
    return %c0_i32, %c0_i32_0 : i32, i32
  }
  func.func @transform_3(%arg0: i32) -> (i32, i32) {
    %c0_i32 = arith.constant 0 : i32
    %c0_i32_0 = arith.constant 0 : i32
    %c0_i32_1 = arith.constant 0 : i32
    return %c0_i32, %c0_i32_0 : i32, i32
  }
  func.func @transform_4(%arg0: i32) -> (i32, i32, i32) {
    %c0_i32 = arith.constant 0 : i32
    %c0_i32_0 = arith.constant 0 : i32
    %c0_i32_1 = arith.constant 0 : i32
    return %arg0, %c0_i32, %c0_i32_0 : i32, i32, i32
  }
}

</mosaic_0001>

<bundles_post_ra>
// kernel: tpu_custom_call.1
= control target key start
LH: loop header
LB: loop body
LE: loop exit
PB: predicated region body
PF: predicated region fallthrough
CT: control target
= control target key end

     0   :  { %s2270_s15 = smov 0   ;;  %s2792_s0 = inlined_call_operand.vmem [shape: bf16[2,306,12], index: 0, kind: input, shape index: {}]   ;;  %s2793_s1 = inlined_call_operand.vmem [shape: bf16[4,12,64], index: 1, kind: input, shape index: {}]   ;;  %s2794_s2 = inlined_call_operand.vmem [shape: f32[1,64], index: 2, kind: input, shape index: {}]   ;;  %s2795_s3 = inlined_call_operand.vmem [shape: f32[272,1], index: 3, kind: input, shape index: {}]   ;;  %s2796_s4 = inlined_call_operand.vmem [shape: bf16[2,272,64], index: 4, kind: output, shape index: {}]  }
   0x1 LB: > { %s1944_s16 = sadd.s32 4294967295, %s2242_s15   ;;  %p1948_p0 = scmp.ge.s32.totalorder %s2242_s15, 1  ;;  %s2242_s15 = sphi %s2270_s15, %s14_s15  }
   0x2   : > { %p162_p1 = scmp.lt.s32.totalorder %s2242_s15, 3 }
   0x4   : > { %p163_p2 = pnand %p1948_p0, %p162_p1 }
   0x5   : > { %p188_p3 = scmp.lt.s32.totalorder (!%p163_p2), %s1944_s16, 1 }
   0x6   : > { %166 = sbr.rel (%p163_p2) target bundleno = 437 (0x1b5), region = 36 }
   0xb   : > { %v2044_v0 = vld [vmem:[%s2793_s1] sm:$0xf]  ;;  %v2192_v1 = vld [vmem:[%s2793_s1] sm:$0x30]  ;;  %vm525_vm0 = vcmask 1045504   ;;  %s2798_s16 = smov (!%p188_p3, %s1944_s16), 1 }
   0xc   : > { %v2045_v2 = vor.u32 %v2192_v1, %v2044_v0  ;;  %v2154_v3 = vld [vmem:[%s2793_s1 + $0x18] sm:$0xf]  ;;  %v2211_v4 = vld [vmem:[%s2793_s1 + $0x18] sm:$0x30]  ;;  %v2131_v6 = vld [vmem:[%s2793_s1 + $0x10] sm:$0xf] }
   0xd   : > { %v2155_v5 = vor.u32 %v2211_v4, %v2154_v3  ;;  %v2210_v7 = vld [vmem:[%s2793_s1 + $0x10] sm:$0x30]  ;;  %v2023_v10 = vld [vmem:[%s2793_s1 + $0x8] sm:$0xf]  ;;  %v2193_v11 = vld [vmem:[%s2793_s1 + $0x8] sm:$0x30] }
   0xe   : > { %v663_v8 = vsel %vm525_vm0, %v2045_v2, 0  ;;  %v2132_v9 = vor.u32 %v2210_v7, %v2131_v6  ;;  %v2244_v12 = vmov 0   ;;  %v1480_v13 = vld [vmem:[%s2795_s3] sm:$0xff]  ;;  %s2220_s9 = smul.u32 156, %s2798_s16  ;;  %v2024_v15 = vor.u32 %v2193_v11, %v2023_v10  ;;  %v1481_v43 = vld [vmem:[%s2795_s3 + $0x8] sm:$0xff]  ;;  %v1482_v44 = vld [vmem:[%s2795_s3 + $0x10] sm:$0xff] }
   0xf   : > { %2231 = vset.pattern.permute.xlu0 %v2244_v12  ;;  %2232 = vset.pattern.permute.xlu1 %v2244_v12  ;;  %v1312_v14 = vsel %vm525_vm0, %v2155_v5, 0  ;;  %vm473_vm1 = vcmask 97280   ;;  %vm1219_vm2 = vcmask 1046528   ;;  %vm327_vm3 = vsmask.f32 7424  ;;  %v1483_v59 = vld [vmem:[%s2795_s3 + $0x18] sm:$0xff] }
  0x10   : > { %672 = vmatpush.bf16.msra.mxu1 %v663_v8  ;;  %1618 = vperm.xlu0 %2231, %v1480_v13   ;;  %v1082_v16 = vsel %vm525_vm0, %v2132_v9, 0  ;;  %s2314_s12 = scalar_lea.vmem %s2792_s0, %s2220_s9  ;;  %v527_v17 = vsel %vm525_vm0, %v2024_v15, 0  ;;  %v1486_v10 = vld [vmem:[%s2795_s3 + $0x30] sm:$0xff]  ;;  %s2221_s30 = smul.u32 136, %s2798_s16  ;;  %vm1854_vm5 = vcmask 519168  }
  0x11   : > { %1321 = vmatpush.bf16.msra.mxu3 %v1312_v14  ;;  %2233 = vset.pattern.permute.xlu2 %v2244_v12  ;;  %v2175_v18 = vld [vmem:[%s2314_s12] sm:$0xff]  ;;  %v2217_v19 = vld [vmem:[%s2314_s12 + $0x8] sm:$0xf0]  ;;  %v2194_v20 = vld [vmem:[%s2314_s12 + $0x10] sm:$0xff] }
  0x12   : > { %1091 = vmatpush.bf16.msra.mxu2 %v1082_v16  ;;  %536 = vmatpush.bf16.msra.mxu0 %v527_v17  ;;  %v2218_v21 = vld [vmem:[%s2314_s12 + $0x8] sm:$0xe]  ;;  %v331_v24 = vshll.u32 %v2175_v18, 16  ;;  %v1221_v26 = vrot.slane %v2194_v20, 1  ;;  %v893_v29 = vshll.u32 %v2194_v20, 16  ;;  %v329_v30 = vshrl.u32 %v2175_v18, 16  ;;  %s2482_s6 = scalar_lea.vmem %s2796_s4, %s2221_s30 }
  0x13   : > { %v2216_v22 = vld [vmem:[%s2314_s12 + $0x8] sm:$0xff]   ;;  %2046 = vmatmul.msk.bf16.vlgmr.msra.gmra.mxu1 %vm473_vm1, %v2175_v18  ;;  %v2219_v25 = vor.u32 %v2218_v21, %v2217_v19  ;;  %v2177_v42 = vld [vmem:[%s2314_s12 + $0x10] sm:$0xff]  ;;  %v2195_v45 = vld [vmem:[%s2314_s12 + $0x18] sm:$0xff]  ;;  %1628 = vperm.xlu1 %2232, %v1482_v44   ;;  %v897_v48 = vshrl.u32 %v2194_v20, 16 }
  0x14   : > { %v2176_v23 = vld [vmem:[%s2314_s12 + $0x8] sm:$0xff]  ;;  %v886_v27 = vshrl.u32 %v2216_v22, 16  ;;  %v888_v28 = vshll.u32 %v2216_v22, 16  ;;  %v333_v33 = vrot.slane %v331_v24, 1  ;;  %v895_v35 = vrot.slane %v893_v29, 1  ;;  %v2178_v58 = vld [vmem:[%s2314_s12 + $0x18] sm:$0xff] }
  0x15   : > { %v336_v31 = vshll.u32 %v2176_v23, 16  ;;  %v1220_v32 = vrot.slane %v2219_v25, 1  ;;  %v340_v46 = vshrl.u32 %v2176_v23, 16  ;;  %v344_v47 = vshll.u32 %v2177_v42, 16  ;;  %v2196_v60 = vld [vmem:[%s2314_s12 + $0x20] sm:$0xff]  ;;  %v2197_v11 = vld [vmem:[%s2314_s12 + $0x28] sm:$0xff] }
  0x16   : > { %v890_v34 = vrot.slane %v888_v28, 1  ;;  %v334_v38 = vor.u32 %v333_v33, %v329_v30  ;;  %v901_v49 = vshll.u32 %v2195_v45, 16  ;;  %v1223_v50 = vrot.slane %v2195_v45, 1  ;;  %v2179_v9 = vld [vmem:[%s2314_s12 + $0x20] sm:$0xff]  ;;  %v2180_v24 = vld [vmem:[%s2314_s12 + $0x28] sm:$0xff]  ;;  %v2199_v44 = vld [vmem:[%s2314_s12 + $0x38] sm:$0xff] }
  0x17   : > { %v338_v36 = vrot.slane %v336_v31, 1  ;;  %v1222_v37 = vsel %vm1219_vm2, %v1220_v32, %v1221_v26  ;;  %v346_v52 = vrot.slane %v344_v47, 1  ;;  %v899_v53 = vor.u32 %v897_v48, %v895_v35  ;;  %v1484_v25 = vld [vmem:[%s2795_s3 + $0x20] sm:$0xff]  ;;  %v1485_v33 = vld [vmem:[%s2795_s3 + $0x28] sm:$0xff] }
  0x18   : > { %2156 = vmatmul.msk.bf16.vlgmr.msra.gmra.mxu3 %vm473_vm1, %v1222_v37  ;;  %v891_v39 = vor.u32 %v890_v34, %v886_v27  ;;  %1623 = vperm.xlu0 %2231, %v1481_v43   ;;  %v903_v54 = vrot.slane %v901_v49, 1  ;;  %v1224_v55 = vsel %vm1219_vm2, %v1221_v26, %v1223_v50  ;;  %v348_v61 = vshrl.u32 %v2177_v42, 16  ;;  %v1487_v26 = vld [vmem:[%s2795_s3 + $0x38] sm:$0xff]  ;;  %v2198_v27 = vld [vmem:[%s2314_s12 + $0x30] sm:$0xff] }
  0x19   : > { %v339_v40 = vsel %vm327_vm3, %v334_v38, %v338_v36  ;;  %v342_v51 = vor.u32 %v340_v46, %v338_v36  ;;  %v352_v62 = vshll.u32 %v2178_v58, 16  ;;  %v905_v63 = vshrl.u32 %v2195_v45, 16  ;;  %1638 = vperm.xlu2 %2233, %v1484_v25   ;;  %v1490_v43 = vld [vmem:[%s2795_s3 + $0x50] sm:$0xff]  ;;  %v2184_v25 = vld [vmem:[%s2314_s12 + $0x48] sm:$0xff] }
  0x1a   : > { %v896_v41 = vsel %vm327_vm3, %v891_v39, %v895_v35  ;;  %2025 = vmatmul.msk.bf16.vlgmr.msra.gmra.mxu0 %vm473_vm1, %v339_v40  ;;  %v904_v57 = vsel %vm327_vm3, %v899_v53, %v903_v54  ;;  %v909_v0 = vshll.u32 %v2196_v60, 16  ;;  %v1225_v1 = vrot.slane %v2196_v60, 1 }
  0x1b   : > { %2133 = vmatmul.msk.bf16.vlgmr.msra.gmra.mxu2 %vm473_vm1, %v896_v41  ;;  %v347_v56 = vsel %vm327_vm3, %v342_v51, %v346_v52  ;;  %1633 = vperm.xlu1 %2232, %v1483_v59   ;;  %v350_v2 = vor.u32 %v348_v61, %v346_v52  ;;  %v354_v3 = vrot.slane %v352_v62, 1  ;;  %v907_v4 = vor.u32 %v905_v63, %v903_v54  ;;  %v2181_v41 = vld [vmem:[%s2314_s12 + $0x30] sm:$0xff]  ;;  %v2200_v59 = vld [vmem:[%s2314_s12 + $0x40] sm:$0xff] }
  0x1c   : > { %v911_v5 = vrot.slane %v909_v0, 1  ;;  %v1226_v6 = vsel %vm1219_vm2, %v1223_v50, %v1225_v1  ;;  %v356_v12 = vshrl.u32 %v2178_v58, 16  ;;  %v360_v13 = vshll.u32 %v2179_v9, 16  ;;  %v1492_v0 = vld [vmem:[%s2795_s3 + $0x60] sm:$0xff] }
  0x1d   : > { %v355_v7 = vsel %vm327_vm3, %v350_v2, %v354_v3  ;;  %v913_v14 = vshrl.u32 %v2196_v60, 16  ;;  %v917_v15 = vshll.u32 %v2197_v11, 16  ;;  %v1227_v16 = vrot.slane %v2197_v11, 1 }
  0x1e   : > { %v912_v8 = vsel %vm327_vm3, %v907_v4, %v911_v5  ;;  %v358_v17 = vor.u32 %v356_v12, %v354_v3  ;;  %v362_v18 = vrot.slane %v360_v13, 1  ;;  %v364_v28 = vshrl.u32 %v2179_v9, 16 }
  0x1f   : > { %v915_v19 = vor.u32 %v913_v14, %v911_v5  ;;  %v919_v20 = vrot.slane %v917_v15, 1  ;;  %v1228_v21 = vsel %vm1219_vm2, %v1225_v1, %v1227_v16  ;;  %v368_v29 = vshll.u32 %v2180_v24, 16 }
  0x20   : > { %1648 = vperm.xlu0 %2231, %v1486_v10   ;;  %v363_v22 = vsel %vm327_vm3, %v358_v17, %v362_v18  ;;  %v921_v30 = vshrl.u32 %v2197_v11, 16  ;;  %v925_v31 = vshll.u32 %v2198_v27, 16  ;;  %v1229_v32 = vrot.slane %v2198_v27, 1  ;;  %v1493_v10 = vld [vmem:[%s2795_s3 + $0x68] sm:$0xff] }
  0x21   : > { %v366_v34 = vor.u32 %v364_v28, %v362_v18  ;;  %v370_v35 = vrot.slane %v368_v29, 1  ;;  %1643 = vperm.xlu2 %2233, %v1485_v33   ;;  %v372_v45 = vshrl.u32 %v2180_v24, 16  ;;  %v376_v46 = vshll.u32 %v2181_v41, 16  ;;  %v2201_v11 = vld [vmem:[%s2314_s12 + $0x48] sm:$0xff] }
  0x22   : > { %v923_v36 = vor.u32 %v921_v30, %v919_v20  ;;  %v927_v37 = vrot.slane %v925_v31, 1  ;;  %v1230_v38 = vsel %vm1219_vm2, %v1227_v16, %v1229_v32  ;;  %v929_v47 = vshrl.u32 %v2198_v27, 16  ;;  %v1495_v27 = vld [vmem:[%s2795_s3 + $0x78] sm:$0xff] }
  0x23   : > { %2047 = vmatmul.msk.bf16.gmra.mxu1 %vm473_vm1, %v2176_v23  ;;  %v920_v23 = vsel %vm327_vm3, %v915_v19, %v919_v20  ;;  %1653 = vperm.xlu1 %2232, %v1487_v26   ;;  %v371_v39 = vsel %vm327_vm3, %v366_v34, %v370_v35  ;;  %v933_v48 = vshll.u32 %v2199_v44, 16  ;;  %v1231_v49 = vrot.slane %v2199_v44, 1  ;;  %v1491_v19 = vld [vmem:[%s2795_s3 + $0x58] sm:$0xff]  ;;  %v2202_v26 = vld [vmem:[%s2314_s12 + $0x50] sm:$0xff] }
  0x24   : > { %v928_v40 = vsel %vm327_vm3, %v923_v36, %v927_v37  ;;  %v374_v50 = vor.u32 %v372_v45, %v370_v35  ;;  %v378_v51 = vrot.slane %v376_v46, 1  ;;  %v931_v52 = vor.u32 %v929_v47, %v927_v37  ;;  %v2448_v46 = vld [vmem:[%s2314_s12 + $0x50] sm:$0xff]  ;;  %v2451_v47 = vld [vmem:[%s2314_s12 + $0x58] sm:$0xff] }
  0x25   : > { %v935_v53 = vrot.slane %v933_v48, 1  ;;  %v1232_v54 = vsel %vm1219_vm2, %v1229_v32, %v1231_v49  ;;  %v380_v60 = vshrl.u32 %v2181_v41, 16  ;;  %v937_v62 = vshrl.u32 %v2199_v44, 16  ;;  %v1494_v48 = vld [vmem:[%s2795_s3 + $0x70] sm:$0xff] }
  0x26   : > { %v941_v63 = vshll.u32 %v2200_v59, 16  ;;  %v1233_v1 = vrot.slane %v2200_v59, 1  ;;  %v945_v14 = vshrl.u32 %v2200_v59, 16  ;;  %v949_v15 = vshll.u32 %v2201_v11, 16 }
  0x27   : > { %v382_v2 = vor.u32 %v380_v60, %v378_v51  ;;  %v939_v4 = vor.u32 %v937_v62, %v935_v53  ;;  %v1235_v16 = vrot.slane %v2201_v11, 1  ;;  %v400_v29 = vshll.u32 %v2184_v25, 16 }
  0x28   : > { %2157 = vmatmul.msk.bf16.gmra.mxu3 %vm473_vm1, %v1224_v55  ;;  %v379_v55 = vsel %vm327_vm3, %v374_v50, %v378_v51  ;;  %v943_v5 = vrot.slane %v941_v63, 1  ;;  %v953_v31 = vshrl.u32 %v2201_v11, 16  ;;  %v957_v32 = vshll.u32 %v2202_v26, 16 }
  0x29   : > { %v1237_v33 = vrot.slane %v2202_v26, 1  ;;  %v402_v35 = vrot.slane %v400_v29, 1  ;;  %v1239_v60 = vrot.slane %v2451_v47, 1 }
  0x2a   : > { %2026 = vmatmul.msk.bf16.gmra.mxu0 %vm473_vm1, %v347_v56  ;;  %v936_v56 = vsel %vm327_vm3, %v931_v52, %v935_v53  ;;  %v947_v20 = vor.u32 %v945_v14, %v943_v5  ;;  %v959_v37 = vrot.slane %v957_v32, 1  ;;  %v2462_v52 = vld [vmem:[%s2794_s2] ss:$0 sm:$0xff] }
  0x2b   : > { %2134 = vmatmul.msk.bf16.gmra.mxu2 %vm473_vm1, %v904_v57  ;;  %1668 = vperm.xlu1 %2232, %v1490_v43   ;;  %v2182_v57 = vld [vmem:[%s2314_s12 + $0x38] sm:$0xff] }
  0x2c   : > { %v384_v61 = vshll.u32 %v2182_v57, 16  ;;  %v388_v12 = vshrl.u32 %v2182_v57, 16 }
  0x2e   : > { %v386_v3 = vrot.slane %v384_v61, 1 }
  0x30   : > { %v390_v17 = vor.u32 %v388_v12, %v386_v3 }
  0x33   : > { %2048 = vmatmul.msk.bf16.gmra.mxu1 %vm473_vm1, %v2177_v42  ;;  %v1489_v42 = vld [vmem:[%s2795_s3 + $0x48] sm:$0xff]  ;;  %1683 = vperm.xlu1 %2232, %v1493_v10  }
  0x34   : > { %1663 = vperm.xlu0 %2231, %v1489_v42  }
  0x38   : > { %2158 = vmatmul.msk.bf16.gmra.mxu3 %vm473_vm1, %v1226_v6  ;;  %v1234_v6 = vsel %vm1219_vm2, %v1231_v49, %v1233_v1  ;;  %v1498_v49 = vld [vmem:[%s2795_s3 + $0x90] sm:$0xff] }
  0x3a   : > { %2027 = vmatmul.msk.bf16.gmra.mxu0 %vm473_vm1, %v355_v7  ;;  %v387_v7 = vsel %vm327_vm3, %v382_v2, %v386_v3 }
  0x3b   : > { %2135 = vmatmul.msk.bf16.gmra.mxu2 %vm473_vm1, %v912_v8  ;;  %v944_v8 = vsel %vm327_vm3, %v939_v4, %v943_v5  ;;  %v1501_v4 = vld [vmem:[%s2795_s3 + $0xa8] sm:$0xff] }
  0x3c   : > { %1678 = vperm.xlu0 %2231, %v1492_v0  }
  0x43   : > { %2049 = vmatmul.msk.bf16.gmra.mxu1 %vm473_vm1, %v2178_v58  ;;  %v1488_v58 = vld [vmem:[%s2795_s3 + $0x40] sm:$0xff] }
  0x44   : > { %1658 = vperm.xlu2 %2233, %v1488_v58   ;;  %1693 = vperm.xlu0 %2231, %v1495_v27   ;;  %v965_v58 = vshll.u32 %v2451_v47, 16 }
  0x46   : > { %v967_v3 = vrot.slane %v965_v58, 1 }
  0x48   : > { %2159 = vmatmul.msk.bf16.gmra.mxu3 %vm473_vm1, %v1228_v21  ;;  %v951_v21 = vrot.slane %v949_v15, 1 }
  0x4a   : > { %2028 = vmatmul.msk.bf16.gmra.mxu0 %vm473_vm1, %v363_v22  ;;  %v1236_v22 = vsel %vm1219_vm2, %v1233_v1, %v1235_v16  ;;  %v955_v36 = vor.u32 %v953_v31, %v951_v21  ;;  %v412_v31 = vshrl.u32 %v2448_v46, 16 }
  0x4b   : > { %2136 = vmatmul.msk.bf16.gmra.mxu2 %vm473_vm1, %v920_v23 }
  0x4c   : > { %1673 = vperm.xlu2 %2233, %v1491_v19   ;;  %v960_v42 = vsel %vm327_vm3, %v955_v36, %v959_v37  ;;  %1708 = vperm.xlu0 %2231, %v1498_v49   ;;  %v1497_v49 = vld [vmem:[%s2795_s3 + $0x88] sm:$0xff] }
  0x53   : > { %2050 = vmatmul.msk.bf16.gmra.mxu1 %vm473_vm1, %v2179_v9  ;;  %v2183_v9 = vld [vmem:[%s2314_s12 + $0x40] sm:$0xff] }
  0x54   : > { %v392_v13 = vshll.u32 %v2183_v9, 16  ;;  %v396_v28 = vshrl.u32 %v2183_v9, 16  ;;  %1688 = vperm.xlu2 %2233, %v1494_v48   ;;  %1723 = vperm.xlu0 %2231, %v1501_v4   ;;  %v2537_v4 = vld [vmem:[%s2314_s12 + $0x68] sm:$0xff] }
  0x56   : > { %v394_v18 = vrot.slane %v392_v13, 1 }
  0x58   : > { %2160 = vmatmul.msk.bf16.gmra.mxu3 %vm473_vm1, %v1230_v38  ;;  %v395_v23 = vsel %vm327_vm3, %v390_v17, %v394_v18  ;;  %v398_v34 = vor.u32 %v396_v28, %v394_v18  ;;  %v1496_v38 = vld [vmem:[%s2795_s3 + $0x80] sm:$0xff] }
  0x59   : > { %1698 = vperm.xlu1 %2232, %v1496_v38  }
  0x5a   : > { %2029 = vmatmul.msk.bf16.gmra.mxu0 %vm473_vm1, %v371_v39  ;;  %v1238_v39 = vsel %vm1219_vm2, %v1235_v16, %v1237_v33 }
  0x5b   : > { %2137 = vmatmul.msk.bf16.gmra.mxu2 %vm473_vm1, %v928_v40 }
  0x5c   : > { %1703 = vperm.xlu2 %2233, %v1497_v49  }
  0x63   : > { %2051 = vmatmul.msk.bf16.gmra.mxu1 %vm473_vm1, %v2180_v24  ;;  %v952_v24 = vsel %vm327_vm3, %v947_v20, %v951_v21  ;;  %v2488_v21 = vld [vmem:[%s2314_s12 + $0x58] sm:$0xff] }
  0x64   : > { %v416_v32 = vshll.u32 %v2488_v21, 16 }
  0x68   : > { %2161 = vmatmul.msk.bf16.gmra.mxu3 %vm473_vm1, %v1232_v54  ;;  %v404_v54 = vshrl.u32 %v2184_v25, 16 }
  0x6a   : > { %2030 = vmatmul.msk.bf16.gmra.mxu0 %vm473_vm1, %v379_v55  ;;  %v408_v55 = vshll.u32 %v2448_v46, 16  ;;  %v406_v0 = vor.u32 %v404_v54, %v402_v35 }
  0x6b   : > { %2138 = vmatmul.msk.bf16.gmra.mxu2 %vm473_vm1, %v936_v56 }
  0x6c   : > { %v410_v1 = vrot.slane %v408_v55, 1 }
  0x6e   : > { %v411_v12 = vsel %vm327_vm3, %v406_v0, %v410_v1 }
  0x73   : > { %2052 = vmatmul.msk.bf16.gmra.mxu1 %vm473_vm1, %v2181_v41  ;;  %v403_v41 = vsel %vm327_vm3, %v398_v34, %v402_v35  ;;  %v969_v35 = vshrl.u32 %v2451_v47, 16 }
  0x78   : > { %2162 = vmatmul.msk.bf16.gmra.mxu3 %vm473_vm1, %v1234_v6 }
  0x7a   : > { %2031 = vmatmul.msk.bf16.gmra.mxu0 %vm473_vm1, %v387_v7  ;;  %v1240_v7 = vsel %vm1219_vm2, %v1237_v33, %v1239_v60 }
  0x7b   : > { %2139 = vmatmul.msk.bf16.gmra.mxu2 %vm473_vm1, %v944_v8 }
  0x82   : > { %v1619_v63 = vpop.permute.xlu0 %1618 }
  0x83   : > { %2053 = vmatmul.msk.bf16.gmra.mxu1 %vm473_vm1, %v2182_v57  ;;  %v961_v57 = vshrl.u32 %v2202_v26, 16 }
  0x85   : > { %v963_v2 = vor.u32 %v961_v57, %v959_v37 }
  0x87   : > { %v968_v14 = vsel %vm327_vm3, %v963_v2, %v967_v3 }
  0x88   : > { %2163 = vmatmul.msk.bf16.gmra.mxu3 %vm473_vm1, %v1236_v22  ;;  %v2493_v22 = vld [vmem:[%s2314_s12 + $0x60] sm:$0xff] }
  0x89   : > { %v973_v36 = vshll.u32 %v2493_v22, 16  ;;  %v1241_v38 = vrot.slane %v2493_v22, 1 }
  0x8a   : > { %2032 = vmatmul.msk.bf16.gmra.mxu0 %vm473_vm1, %v395_v23  ;;  %v1499_v23 = vld [vmem:[%s2795_s3 + $0x98] sm:$0xff] }
  0x8b   : > { %2140 = vmatmul.msk.bf16.gmra.mxu2 %vm473_vm1, %v952_v24  ;;  %v1504_v24 = vld [vmem:[%s2795_s3 + $0xc0] sm:$0xff]  ;;  %1713 = vperm.xlu1 %2232, %v1499_v23   ;;  %v975_v48 = vrot.slane %v973_v36, 1  ;;  %v1242_v54 = vsel %vm1219_vm2, %v1239_v60, %v1241_v38 }
  0x8c   : > { %1738 = vperm.xlu0 %2231, %v1504_v24  }
  0x90   : > { %v674_v30 = vpop.f32.mrf.mxu1 }
  0x93   : > { %2054 = vmatmul.msk.bf16.gmra.mxu1 %vm473_vm1, %v2183_v9 }
  0x97   : > { %v538_v40 = vpop.f32.mrf.mxu0 }
  0x98   : > { %2164 = vmatmul.msk.bf16.gmra.mxu3 %vm473_vm1, %v1238_v39  ;;  %v676_v43 = vpop.f32.mrf.mxu1  ;;  %v675_v44 = vadd.f32 %v674_v30, %v538_v40 }
  0x9a   : > { %2033 = vmatmul.msk.bf16.gmra.mxu0 %vm473_vm1, %v403_v41 }
  0x9b   : > { %2141 = vmatmul.msk.bf16.gmra.mxu2 %vm473_vm1, %v960_v42  ;;  %v1323_v45 = vpop.f32.mrf.mxu3  ;;  %v1629_v42 = vpop.permute.xlu1 %1628 }
  0x9e   : > { %v1093_v50 = vpop.f32.mrf.mxu2 }
  0x9f   : > { %v1178_v51 = vadd.f32 %v1093_v50, %v675_v44  ;;  %v540_v53 = vpop.f32.mrf.mxu0  ;;  %v418_v44 = vrot.slane %v416_v32, 1  ;;  %v1502_v50 = vld [vmem:[%s2795_s3 + $0xb0] sm:$0xff]  ;;  %v1508_v32 = vld [vmem:[%s2795_s3 + $0xe0] sm:$0xff] }
  0xa0   : > { %v679_v56 = vpop.f32.mrf.mxu1  ;;  %v677_v5 = vadd.f32 %v676_v43, %v540_v53  ;;  %v414_v43 = vor.u32 %v412_v31, %v410_v1  ;;  %1728 = vperm.xlu1 %2232, %v1502_v50   ;;  %v1500_v31 = vld [vmem:[%s2795_s3 + $0xa0] sm:$0xff]  ;;  %v2576_v50 = vld [vmem:[%s2314_s12 + $0x68] sm:$0xff] }
  0xa1   : > { %v1408_v59 = vadd.f32 %v1323_v45, %v1178_v51  ;;  %v971_v45 = vor.u32 %v969_v35, %v967_v3  ;;  %v1507_v51 = vld [vmem:[%s2795_s3 + $0xd8] sm:$0xff]  ;;  %v2532_v3 = vld [vmem:[%s2314_s12 + $0x60] sm:$0xff]  ;;  %1718 = vperm.xlu2 %2233, %v1500_v31  }
  0xa2   : > { %1753 = vperm.xlu0 %2231, %v1507_v51   ;;  %v2581_v51 = vld [vmem:[%s2314_s12 + $0x70] sm:$0xff]  ;;  %v2619_v31 = vld [vmem:[%s2314_s12 + $0x78] sm:$0xff] }
  0xa3   : > { %v1446_v61 = vadd.f32 %v2462_v52, %v1408_v59  ;;  %v1325_v62 = vpop.f32.mrf.mxu3  ;;  %2055 = vmatmul.msk.bf16.gmra.mxu1 %vm473_vm1, %v2184_v25  ;;  %v1624_v25 = vpop.permute.xlu0 %1623  ;;  %v419_v59 = vsel %vm327_vm3, %v414_v43, %v418_v44 }
  0xa5   : > { %vm1514_vm4 = vcmp.gt.f32.partialorder %v1446_v61, 0.0  ;;  %v1548_v6 = vmul.f32 0.2, %v1446_v61 }
  0xa6   : > { %v1095_v8 = vpop.f32.mrf.mxu2 }
  0xa7   : > { %v1179_v9 = vadd.f32 %v1095_v8, %v677_v5  ;;  %v1582_v10 = vsel %vm1514_vm4, %v1446_v61, %v1548_v6  ;;  %v543_v11 = vpop.f32.mrf.mxu0  ;;  %v1505_v5 = vld [vmem:[%s2795_s3 + $0xc8] sm:$0xff]  ;;  %v1510_v6 = vld [vmem:[%s2795_s3 + $0xf0] sm:$0xff] }
  0xa8   : > { %v1786_v13 = vmul.f32 %v1619_v63, %v1582_v10  ;;  %2165 = vmatmul.msk.bf16.gmra.mxu3 %vm473_vm1, %v1240_v7  ;;  %v681_v15 = vpop.f32.mrf.mxu1  ;;  %v680_v19 = vadd.f32 %v679_v56, %v543_v11  ;;  %v1634_v7 = vpop.permute.xlu1 %1633  ;;  %1743 = vperm.xlu1 %2232, %v1505_v5  }
  0xa9   : > { %v1409_v16 = vadd.f32 %v1325_v62, %v1179_v9  ;;  %v976_v62 = vsel %vm327_vm3, %v971_v45, %v975_v48 }
  0xaa   : > { %v1820_v17 = vpack.c.bf16 %v1786_v13, %v1786_v13  ;;  %2034 = vmatmul.msk.bf16.gmra.mxu0 %vm473_vm1, %v411_v12  ;;  %1768 = vperm.xlu0 %2231, %v1510_v6   ;;  %v420_v13 = vshrl.u32 %v2488_v21, 16 }
  0xab   : > { %v1447_v18 = vadd.f32 %v2462_v52, %v1409_v16  ;;  %2142 = vmatmul.msk.bf16.gmra.mxu2 %vm473_vm1, %v968_v14  ;;  %v1328_v20 = vpop.f32.mrf.mxu3  ;;  %v424_v14 = vshll.u32 %v2532_v3, 16 }
  0xac   : > { %1855 = vst.msk [vmem:[%s2482_s6] sm:$0xf] %vm1854_vm5, %v1820_v17  ;;  %v977_v17 = vshrl.u32 %v2493_v22, 16 }
  0xad   : > { %vm1515_vm6 = vcmp.gt.f32.partialorder %v1447_v18, 0.0  ;;  %v1549_v26 = vmul.f32 0.2, %v1447_v18 }
  0xae   : > { %v1098_v27 = vpop.f32.mrf.mxu2 }
  0xaf   : > { %v1180_v28 = vadd.f32 %v1098_v27, %v680_v19  ;;  %v1583_v29 = vsel %vm1515_vm6, %v1447_v18, %v1549_v26  ;;  %v545_v30 = vpop.f32.mrf.mxu0  ;;  %v981_v18 = vshll.u32 %v2537_v4, 16  ;;  %v1639_v26 = vpop.permute.xlu2 %1638  ;;  %v422_v27 = vor.u32 %v420_v13, %v418_v44 }
  0xb0   : > { %v1787_v33 = vmul.f32 %v1624_v25, %v1583_v29  ;;  %v684_v34 = vpop.f32.mrf.mxu1  ;;  %v682_v53 = vadd.f32 %v681_v15, %v545_v30  ;;  %v979_v29 = vor.u32 %v977_v17, %v975_v48  ;;  %1758 = vperm.xlu1 %2232, %v1508_v32   ;;  %v1509_v32 = vld [vmem:[%s2795_s3 + $0xe8] sm:$0xff] }
  0xb1   : > { %v1410_v37 = vadd.f32 %v1328_v20, %v1180_v28  ;;  %v1243_v20 = vrot.slane %v2537_v4, 1  ;;  %v426_v28 = vrot.slane %v424_v14, 1  ;;  %v983_v30 = vrot.slane %v981_v18, 1  ;;  %v1649_v14 = vpop.permute.xlu0 %1648 }
  0xb2   : > { %v1821_v39 = vpack.c.bf16 %v1787_v33, %v1787_v33  ;;  %v1513_v33 = vld [vmem:[%s2795_s3 + $0x108] sm:$0xff] }
  0xb3   : > { %v1448_v40 = vadd.f32 %v2462_v52, %v1410_v37  ;;  %v1330_v41 = vpop.f32.mrf.mxu3  ;;  %2056 = vmatmul.msk.bf16.gmra.mxu1 %vm473_vm1, %v2448_v46  ;;  %v1244_v35 = vsel %vm1219_vm2, %v1241_v38, %v1243_v20  ;;  %1783 = vperm.xlu0 %2231, %v1513_v33   ;;  %v984_v43 = vsel %vm327_vm3, %v979_v29, %v983_v30  ;;  %v1654_v33 = vpop.permute.xlu1 %1653 }
  0xb4   : > { %1856 = vst.msk [vmem:[%s2482_s6 + $0x4] sm:$0xf] %vm1854_vm5, %v1821_v39 }
  0xb5   : > { %vm1516_vm7 = vcmp.gt.f32.partialorder %v1448_v40, 0.0  ;;  %v1550_v46 = vmul.f32 0.2, %v1448_v40 }
  0xb6   : > { %v1100_v55 = vpop.f32.mrf.mxu2 }
  0xb7   : > { %v1181_v56 = vadd.f32 %v1100_v55, %v682_v53  ;;  %v1584_v57 = vsel %vm1516_vm7, %v1448_v40, %v1550_v46  ;;  %v548_v58 = vpop.f32.mrf.mxu0  ;;  %v1503_v53 = vld [vmem:[%s2795_s3 + $0xb8] sm:$0xff] }
  0xb8   : > { %v1788_v61 = vmul.f32 %v1629_v42, %v1584_v57  ;;  %2166 = vmatmul.msk.bf16.gmra.mxu3 %vm473_vm1, %v1242_v54  ;;  %v686_v47 = vpop.f32.mrf.mxu1  ;;  %v685_v1 = vadd.f32 %v684_v34, %v548_v58  ;;  %v1511_v46 = vld [vmem:[%s2795_s3 + $0xf8] sm:$0xff]  ;;  %v1644_v54 = vpop.permute.xlu2 %1643  ;;  %1733 = vperm.xlu2 %2233, %v1503_v53  }
  0xb9   : > { %v1411_v63 = vadd.f32 %v1330_v41, %v1181_v56  ;;  %v427_v41 = vsel %vm327_vm3, %v422_v27, %v426_v28  ;;  %1773 = vperm.xlu1 %2232, %v1511_v46  }
  0xba   : > { %v1822_v60 = vpack.c.bf16 %v1788_v61, %v1788_v61  ;;  %2035 = vmatmul.msk.bf16.gmra.mxu0 %vm473_vm1, %v419_v59  ;;  %v428_v61 = vshrl.u32 %v2532_v3, 16 }
  0xbb   : > { %v1449_v0 = vadd.f32 %v2462_v52, %v1411_v63  ;;  %2143 = vmatmul.msk.bf16.gmra.mxu2 %vm473_vm1, %v976_v62  ;;  %v1333_v2 = vpop.f32.mrf.mxu3  ;;  %v432_v62 = vshll.u32 %v2576_v50, 16 }
  0xbc   : > { %1857 = vst.msk [vmem:[%s2482_s6 + $0x8] sm:$0xf] %vm1854_vm5, %v1822_v60  ;;  %v985_v60 = vshrl.u32 %v2537_v4, 16 }
  0xbd   : > { %vm1517_vm8 = vcmp.gt.f32.partialorder %v1449_v0, 0.0  ;;  %v1551_v8 = vmul.f32 0.2, %v1449_v0 }
  0xbe   : > { %v1103_v9 = vpop.f32.mrf.mxu2 }
  0xbf   : > { %v1182_v10 = vadd.f32 %v1103_v9, %v685_v1  ;;  %v1585_v11 = vsel %vm1517_vm8, %v1449_v0, %v1551_v8  ;;  %v550_v12 = vpop.f32.mrf.mxu0  ;;  %v989_v0 = vshll.u32 %v2581_v51, 16  ;;  %v430_v8 = vor.u32 %v428_v61, %v426_v28 }
  0xc0   : > { %v1789_v15 = vmul.f32 %v1634_v7, %v1585_v11  ;;  %v689_v16 = vpop.f32.mrf.mxu1  ;;  %v687_v34 = vadd.f32 %v686_v47, %v550_v12  ;;  %v434_v9 = vrot.slane %v432_v62, 1  ;;  %v1506_v12 = vld [vmem:[%s2795_s3 + $0xd0] sm:$0xff] }
  0xc1   : > { %v1412_v19 = vadd.f32 %v1333_v2, %v1182_v10  ;;  %v1245_v2 = vrot.slane %v2581_v51, 1  ;;  %v987_v10 = vor.u32 %v985_v60, %v983_v30  ;;  %v991_v11 = vrot.slane %v989_v0, 1  ;;  %1748 = vperm.xlu2 %2233, %v1506_v12   ;;  %v2614_v30 = vld [vmem:[%s2314_s12 + $0x70] sm:$0xff] }
  0xc2   : > { %v1823_v23 = vpack.c.bf16 %v1789_v15, %v1789_v15 }
  0xc3   : > { %v1450_v24 = vadd.f32 %v2462_v52, %v1412_v19  ;;  %v1335_v25 = vpop.f32.mrf.mxu3  ;;  %2057 = vmatmul.msk.bf16.gmra.mxu1 %vm473_vm1, %v2488_v21 }
  0xc4   : > { %1858 = vst.msk [vmem:[%s2482_s6 + $0xc] sm:$0xf] %vm1854_vm5, %v1823_v23  ;;  %v435_v23 = vsel %vm327_vm3, %v430_v8, %v434_v9 }
  0xc5   : > { %vm1518_vm9 = vcmp.gt.f32.partialorder %v1450_v24, 0.0  ;;  %v1552_v21 = vmul.f32 0.2, %v1450_v24 }
  0xc6   : > { %v1105_v36 = vpop.f32.mrf.mxu2 }
  0xc7   : > { %v1183_v37 = vadd.f32 %v1105_v36, %v687_v34  ;;  %v1586_v39 = vsel %vm1518_vm9, %v1450_v24, %v1552_v21  ;;  %v553_v40 = vpop.f32.mrf.mxu0 }
  0xc8   : > { %v1790_v42 = vmul.f32 %v1639_v26, %v1586_v39  ;;  %2167 = vmatmul.msk.bf16.gmra.mxu3 %vm473_vm1, %v1244_v35  ;;  %v691_v22 = vpop.f32.mrf.mxu1  ;;  %v690_v48 = vadd.f32 %v689_v16, %v553_v40  ;;  %v436_v39 = vshrl.u32 %v2576_v50, 16  ;;  %v440_v40 = vshll.u32 %v2614_v30, 16 }
  0xc9   : > { %v1413_v44 = vadd.f32 %v1335_v25, %v1183_v37  ;;  %v992_v25 = vsel %vm327_vm3, %v987_v10, %v991_v11  ;;  %1763 = vperm.xlu2 %2233, %v1509_v32   ;;  %v2654_v10 = vld [vmem:[%s2314_s12 + $0x80] sm:$0xff] }
  0xca   : > { %v1824_v38 = vpack.c.bf16 %v1790_v42, %v1790_v42  ;;  %2036 = vmatmul.msk.bf16.gmra.mxu0 %vm473_vm1, %v427_v41  ;;  %v438_v53 = vor.u32 %v436_v39, %v434_v9  ;;  %v442_v46 = vrot.slane %v440_v40, 1  ;;  %v2649_v9 = vld [vmem:[%s2314_s12 + $0x78] sm:$0xff] }
  0xcb   : > { %v1451_v45 = vadd.f32 %v2462_v52, %v1413_v44  ;;  %2144 = vmatmul.msk.bf16.gmra.mxu2 %vm473_vm1, %v984_v43  ;;  %v1338_v49 = vpop.f32.mrf.mxu3  ;;  %v993_v43 = vshrl.u32 %v2581_v51, 16 }
  0xcc   : > { %1859 = vst.msk [vmem:[%s2482_s6 + $0x10] sm:$0xf] %vm1854_vm5, %v1824_v38  ;;  %v1247_v38 = vrot.slane %v2619_v31, 1  ;;  %v443_v60 = vsel %vm327_vm3, %v438_v53, %v442_v46  ;;  %v2683_v53 = vld [vmem:[%s2314_s12 + $0x88] sm:$0xff] }
  0xcd   : > { %vm1519_vm10 = vcmp.gt.f32.partialorder %v1451_v45, 0.0  ;;  %v1553_v55 = vmul.f32 0.2, %v1451_v45 }
  0xce   : > { %v1108_v56 = vpop.f32.mrf.mxu2 }
  0xcf   : > { %v1184_v57 = vadd.f32 %v1108_v56, %v690_v48  ;;  %v1587_v58 = vsel %vm1519_vm10, %v1451_v45, %v1553_v55  ;;  %v555_v59 = vpop.f32.mrf.mxu0  ;;  %v1512_v56 = vld [vmem:[%s2795_s3 + $0x100] sm:$0xff] }
  0xd0   : > { %v1791_v47 = vmul.f32 %v1644_v54, %v1587_v58  ;;  %v694_v63 = vpop.f32.mrf.mxu1  ;;  %v692_v13 = vadd.f32 %v691_v22, %v555_v59  ;;  %v997_v22 = vshll.u32 %v2619_v31, 16  ;;  %v995_v54 = vor.u32 %v993_v43, %v991_v11  ;;  %v1659_v58 = vpop.permute.xlu2 %1658 }
  0xd1   : > { %v1414_v1 = vadd.f32 %v1338_v49, %v1184_v57  ;;  %1778 = vperm.xlu2 %2233, %v1512_v56   ;;  %v1664_v11 = vpop.permute.xlu0 %1663 }
  0xd2   : > { %v1825_v5 = vpack.c.bf16 %v1791_v47, %v1791_v47  ;;  %v999_v55 = vrot.slane %v997_v22, 1 }
  0xd3   : > { %v1452_v6 = vadd.f32 %v2462_v52, %v1414_v1  ;;  %v1340_v7 = vpop.f32.mrf.mxu3  ;;  %2058 = vmatmul.msk.bf16.gmra.mxu1 %vm473_vm1, %v2532_v3  ;;  %v1246_v3 = vsel %vm1219_vm2, %v1243_v20, %v1245_v2 }
  0xd4   : > { %1860 = vst.msk [vmem:[%s2482_s6 + $0x14] sm:$0xf] %vm1854_vm5, %v1825_v5  ;;  %v1000_v1 = vsel %vm327_vm3, %v995_v54, %v999_v55 }
  0xd5   : > { %vm1520_vm11 = vcmp.gt.f32.partialorder %v1452_v6, 0.0  ;;  %v1554_v15 = vmul.f32 0.2, %v1452_v6 }
  0xd6   : > { %v1110_v16 = vpop.f32.mrf.mxu2 }
  0xd7   : > { %v1185_v17 = vadd.f32 %v1110_v16, %v692_v13  ;;  %v1588_v18 = vsel %vm1520_vm11, %v1452_v6, %v1554_v15  ;;  %v558_v19 = vpop.f32.mrf.mxu0  ;;  %v444_v16 = vshrl.u32 %v2614_v30, 16 }
  0xd8   : > { %v1792_v24 = vmul.f32 %v1649_v14, %v1588_v18  ;;  %2168 = vmatmul.msk.bf16.gmra.mxu3 %vm473_vm1, %v1246_v3  ;;  %v696_v26 = vpop.f32.mrf.mxu1  ;;  %v695_v28 = vadd.f32 %v694_v63, %v558_v19 }
  0xd9   : > { %v1415_v27 = vadd.f32 %v1340_v7, %v1185_v17  ;;  %v448_v17 = vshll.u32 %v2649_v9, 16 }
  0xda   : > { %v1826_v4 = vpack.c.bf16 %v1792_v24, %v1792_v24  ;;  %2037 = vmatmul.msk.bf16.gmra.mxu0 %vm473_vm1, %v435_v23  ;;  %v1001_v23 = vshrl.u32 %v2619_v31, 16  ;;  %v1005_v24 = vshll.u32 %v2654_v10, 16 }
  0xdb   : > { %v1453_v20 = vadd.f32 %v2462_v52, %v1415_v27  ;;  %2145 = vmatmul.msk.bf16.gmra.mxu2 %vm473_vm1, %v992_v25  ;;  %v1343_v29 = vpop.f32.mrf.mxu3 }
  0xdc   : > { %1861 = vst.msk [vmem:[%s2482_s6 + $0x18] sm:$0xf] %vm1854_vm5, %v1826_v4  ;;  %v1003_v32 = vor.u32 %v1001_v23, %v999_v55 }
  0xdd   : > { %vm1521_vm12 = vcmp.gt.f32.partialorder %v1453_v20, 0.0  ;;  %v1555_v34 = vmul.f32 0.2, %v1453_v20 }
  0xde   : > { %v1113_v21 = vpop.f32.mrf.mxu2 }
  0xdf   : > { %v1186_v35 = vadd.f32 %v1113_v21, %v695_v28  ;;  %v1589_v36 = vsel %vm1521_vm12, %v1453_v20, %v1555_v34  ;;  %v560_v37 = vpop.f32.mrf.mxu0  ;;  %v446_v28 = vor.u32 %v444_v16, %v442_v46  ;;  %v1669_v21 = vpop.permute.xlu1 %1668 }
  0xe0   : > { %v1793_v41 = vmul.f32 %v1654_v33, %v1589_v36  ;;  %v699_v42 = vpop.f32.mrf.mxu1  ;;  %v697_v57 = vadd.f32 %v696_v26, %v560_v37  ;;  %v1249_v26 = vrot.slane %v2654_v10, 1  ;;  %v1007_v33 = vrot.slane %v1005_v24, 1  ;;  %v1674_v46 = vpop.permute.xlu2 %1673 }
  0xe1   : > { %v1416_v44 = vadd.f32 %v1343_v29, %v1186_v35  ;;  %v450_v29 = vrot.slane %v448_v17, 1 }
  0xe2   : > { %v1827_v45 = vpack.c.bf16 %v1793_v41, %v1793_v41  ;;  %v1250_v36 = vsel %vm1219_vm2, %v1247_v38, %v1249_v26  ;;  %v1008_v43 = vsel %vm327_vm3, %v1003_v32, %v1007_v33 }
  0xe3   : > { %v1454_v48 = vadd.f32 %v2462_v52, %v1416_v44  ;;  %v1345_v49 = vpop.f32.mrf.mxu3  ;;  %2059 = vmatmul.msk.bf16.gmra.mxu1 %vm473_vm1, %v2576_v50  ;;  %v1248_v50 = vsel %vm1219_vm2, %v1245_v2, %v1247_v38  ;;  %v451_v41 = vsel %vm327_vm3, %v446_v28, %v450_v29 }
  0xe4   : > { %1862 = vst.msk [vmem:[%s2482_s6 + $0x1c] sm:$0xf] %vm1854_vm5, %v1827_v45 }
  0xe5   : > { %vm1522_vm13 = vcmp.gt.f32.partialorder %v1454_v48, 0.0  ;;  %v1556_v59 = vmul.f32 0.2, %v1454_v48 }
  0xe6   : > { %v1115_v61 = vpop.f32.mrf.mxu2 }
  0xe7   : > { %v1187_v62 = vadd.f32 %v1115_v61, %v697_v57  ;;  %v1590_v47 = vsel %vm1522_vm13, %v1454_v48, %v1556_v59  ;;  %v563_v63 = vpop.f32.mrf.mxu0  ;;  %v452_v59 = vshrl.u32 %v2649_v9, 16 }
  0xe8   : > { %v1794_v0 = vmul.f32 %v1659_v58, %v1590_v47  ;;  %2169 = vmatmul.msk.bf16.gmra.mxu3 %vm473_vm1, %v1248_v50  ;;  %v701_v5 = vpop.f32.mrf.mxu1  ;;  %v700_v7 = vadd.f32 %v699_v42, %v563_v63  ;;  %v1009_v47 = vshrl.u32 %v2654_v10, 16  ;;  %v1013_v63 = vshll.u32 %v2683_v53, 16 }
  0xe9   : > { %v1417_v6 = vadd.f32 %v1345_v49, %v1187_v62  ;;  %v2678_v49 = vld [vmem:[%s2314_s12 + $0x80] sm:$0xff] }
  0xea   : > { %v1828_v51 = vpack.c.bf16 %v1794_v0, %v1794_v0  ;;  %2038 = vmatmul.msk.bf16.gmra.mxu0 %vm473_vm1, %v443_v60  ;;  %v456_v50 = vshll.u32 %v2678_v49, 16  ;;  %v1251_v0 = vrot.slane %v2683_v53, 1 }
  0xeb   : > { %v1455_v2 = vadd.f32 %v2462_v52, %v1417_v6  ;;  %2146 = vmatmul.msk.bf16.gmra.mxu2 %vm473_vm1, %v1000_v1  ;;  %v1348_v8 = vpop.f32.mrf.mxu3 }
  0xec   : > { %1863 = vst.msk [vmem:[%s2482_s6 + $0x20] sm:$0xf] %vm1854_vm5, %v1828_v51  ;;  %v454_v51 = vor.u32 %v452_v59, %v450_v29 }
  0xed   : > { %vm1523_vm14 = vcmp.gt.f32.partialorder %v1455_v2, 0.0  ;;  %v1557_v12 = vmul.f32 0.2, %v1455_v2 }
  0xee   : > { %v1118_v13 = vpop.f32.mrf.mxu2 }
  0xef   : > { %v1188_v14 = vadd.f32 %v1118_v13, %v700_v7  ;;  %v1591_v15 = vsel %vm1523_vm14, %v1455_v2, %v1557_v12  ;;  %v565_v3 = vpop.f32.mrf.mxu0  ;;  %v458_v2 = vrot.slane %v456_v50, 1  ;;  %v1011_v7 = vor.u32 %v1009_v47, %v1007_v33  ;;  %v1679_v13 = vpop.permute.xlu0 %1678 }
  0xf0   : > { %v1795_v18 = vmul.f32 %v1664_v11, %v1591_v15  ;;  %v704_v19 = vpop.f32.mrf.mxu1  ;;  %v702_v34 = vadd.f32 %v701_v5, %v565_v3  ;;  %v235_v11 = vld [vmem:[%s2314_s12 + $0x88] sm:$0x1]  ;;  %v1252_v15 = vsel %vm1219_vm2, %v1249_v26, %v1251_v0  ;;  %v793_v3 = vld [vmem:[%s2314_s12 + $0x90] sm:$0x1] }
  0xf1   : > { %v1418_v25 = vadd.f32 %v1348_v8, %v1188_v14  ;;  %v1015_v8 = vrot.slane %v1013_v63, 1  ;;  %v308_v23 = vunpack.c.l.b16 %v235_v11 }
  0xf2   : > { %v1829_v27 = vpack.c.bf16 %v1795_v18, %v1795_v18 }
  0xf3   : > { %v1456_v4 = vadd.f32 %v2462_v52, %v1418_v25  ;;  %v1350_v20 = vpop.f32.mrf.mxu3  ;;  %2060 = vmatmul.msk.bf16.gmra.mxu1 %vm473_vm1, %v2614_v30  ;;  %v1016_v25 = vsel %vm327_vm3, %v1011_v7, %v1015_v8  ;;  %v326_v32 = vpack.c.b16 %v308_v23, %v308_v23 }
  0xf4   : > { %1864 = vst.msk [vmem:[%s2482_s6 + $0x24] sm:$0xf] %vm1854_vm5, %v1829_v27 }
  0xf5   : > { %vm1524_vm15 = vcmp.gt.f32.partialorder %v1456_v4, 0.0  ;;  %v1558_v35 = vmul.f32 0.2, %v1456_v4 }
  0xf6   : > { %v1120_v37 = vpop.f32.mrf.mxu2 }
  0xf7   : > { %v1189_v39 = vadd.f32 %v1120_v37, %v702_v34  ;;  %v1592_v30 = vsel %vm1524_vm15, %v1456_v4, %v1558_v35  ;;  %v568_v40 = vpop.f32.mrf.mxu0  ;;  %v866_v4 = vunpack.c.l.b16 %v793_v3  ;;  %v1684_v34 = vpop.permute.xlu1 %1683 }
  0xf8   : > { %v1796_v42 = vmul.f32 %v1669_v21, %v1592_v30  ;;  %2170 = vmatmul.msk.bf16.gmra.mxu3 %vm473_vm1, %v1250_v36  ;;  %v706_v22 = vpop.f32.mrf.mxu1  ;;  %v705_v38 = vadd.f32 %v704_v19, %v568_v40  ;;  %v459_v19 = vsel %vm327_vm3, %v454_v51, %v458_v2  ;;  %v460_v30 = vshrl.u32 %v2678_v49, 16  ;;  %v1694_v7 = vpop.permute.xlu0 %1693 }
  0xf9   : > { %v1419_v44 = vadd.f32 %v1350_v20, %v1189_v39  ;;  %v884_v33 = vpack.c.b16 %v866_v4, %v866_v4  ;;  %v464_v40 = vshll.u32 %v326_v32, 16 }
  0xfa   : > { %v1830_v45 = vpack.c.bf16 %v1796_v42, %v1796_v42  ;;  %2039 = vmatmul.msk.bf16.gmra.mxu0 %vm473_vm1, %v451_v41 }
  0xfb   : > { %v1457_v31 = vadd.f32 %v2462_v52, %v1419_v44  ;;  %2147 = vmatmul.msk.bf16.gmra.mxu2 %vm473_vm1, %v1008_v43  ;;  %v1353_v48 = vpop.f32.mrf.mxu3  ;;  %v1017_v43 = vshrl.u32 %v2683_v53, 16 }
  0xfc   : > { %1865 = vst.msk [vmem:[%s2482_s6 + $0x28] sm:$0xf] %vm1854_vm5, %v1830_v45  ;;  %v1253_v45 = vrot.slane %v884_v33, 1 }
  0xfd   : > { %vm1525_vm0 = vcmp.gt.f32.partialorder %v1457_v31, 0.0  ;;  %v1559_v54 = vmul.f32 0.2, %v1457_v31 }
  0xfe   : > { %v1123_v55 = vpop.f32.mrf.mxu2  ;;  %v1254_v50 = vsel %vm1219_vm2, %v1251_v0, %v1253_v45 }
  0xff   : > { %v1190_v56 = vadd.f32 %v1123_v55, %v705_v38  ;;  %v1593_v57 = vsel %vm1525_vm0, %v1457_v31, %v1559_v54  ;;  %v570_v58 = vpop.f32.mrf.mxu0  ;;  %v466_v54 = vrot.slane %v464_v40, 1  ;;  %v1019_v55 = vor.u32 %v1017_v43, %v1015_v8  ;;  %v1699_v23 = vpop.permute.xlu1 %1698 }
 0x100   : > { %v1797_v61 = vmul.f32 %v1674_v46, %v1593_v57  ;;  %v709_v62 = vpop.f32.mrf.mxu1  ;;  %v707_v12 = vadd.f32 %v706_v22, %v570_v58  ;;  %v1021_v22 = vshll.u32 %v884_v33, 16  ;;  %v462_v46 = vor.u32 %v460_v30, %v458_v2  ;;  %v1689_v58 = vpop.permute.xlu2 %1688 }
 0x101   : > { %v1420_v60 = vadd.f32 %v1353_v48, %v1190_v56 }
 0x102   : > { %v1831_v1 = vpack.c.bf16 %v1797_v61, %v1797_v61  ;;  %v1023_v56 = vrot.slane %v1021_v22, 1 }
 0x103   : > { %v1458_v5 = vadd.f32 %v2462_v52, %v1420_v60  ;;  %v1355_v6 = vpop.f32.mrf.mxu3  ;;  %2061 = vmatmul.msk.bf16.gmra.mxu1 %vm473_vm1, %v2649_v9 }
 0x104   : > { %1866 = vst.msk [vmem:[%s2482_s6 + $0x2c] sm:$0xf] %vm1854_vm5, %v1831_v1  ;;  %v1024_v1 = vsel %vm327_vm3, %v1019_v55, %v1023_v56 }
 0x105   : > { %vm1526_vm4 = vcmp.gt.f32.partialorder %v1458_v5, 0.0  ;;  %v1560_v14 = vmul.f32 0.2, %v1458_v5 }
 0x106   : > { %v1125_v16 = vpop.f32.mrf.mxu2 }
 0x107   : > { %v1191_v9 = vadd.f32 %v1125_v16, %v707_v12  ;;  %v1594_v17 = vsel %vm1526_vm4, %v1458_v5, %v1560_v14  ;;  %v573_v18 = vpop.f32.mrf.mxu0 }
 0x108   : > { %v1798_v24 = vmul.f32 %v1679_v13, %v1594_v17  ;;  %2171 = vmatmul.msk.bf16.gmra.mxu3 %vm473_vm1, %v1252_v15  ;;  %v711_v27 = vpop.f32.mrf.mxu1  ;;  %v710_v28 = vadd.f32 %v709_v62, %v573_v18 }
 0x109   : > { %v1421_v20 = vadd.f32 %v1355_v6, %v1191_v9 }
 0x10a   : > { %v1832_v10 = vpack.c.bf16 %v1798_v24, %v1798_v24  ;;  %2040 = vmatmul.msk.bf16.gmra.mxu0 %vm473_vm1, %v459_v19 }
 0x10b   : > { %v1459_v26 = vadd.f32 %v2462_v52, %v1421_v20  ;;  %2148 = vmatmul.msk.bf16.gmra.mxu2 %vm473_vm1, %v1016_v25  ;;  %v1358_v29 = vpop.f32.mrf.mxu3 }
 0x10c   : > { %1867 = vst.msk [vmem:[%s2482_s6 + $0x30] sm:$0xf] %vm1854_vm5, %v1832_v10 }
 0x10d   : > { %vm1527_vm6 = vcmp.gt.f32.partialorder %v1459_v26, 0.0  ;;  %v1561_v21 = vmul.f32 0.2, %v1459_v26 }
 0x10e   : > { %v1128_v35 = vpop.f32.mrf.mxu2 }
 0x10f   : > { %v1192_v36 = vadd.f32 %v1128_v35, %v710_v28  ;;  %v1595_v37 = vsel %vm1527_vm6, %v1459_v26, %v1561_v21  ;;  %v575_v39 = vpop.f32.mrf.mxu0  ;;  %v1704_v21 = vpop.permute.xlu2 %1703 }
 0x110   : > { %v1799_v41 = vmul.f32 %v1684_v34, %v1595_v37  ;;  %v714_v42 = vpop.f32.mrf.mxu1  ;;  %v712_v57 = vadd.f32 %v711_v27, %v575_v39 }
 0x111   : > { %v1422_v44 = vadd.f32 %v1358_v29, %v1192_v36 }
 0x112   : > { %v1833_v31 = vpack.c.bf16 %v1799_v41, %v1799_v41 }
 0x113   : > { %v1460_v38 = vadd.f32 %v2462_v52, %v1422_v44  ;;  %v1360_v48 = vpop.f32.mrf.mxu3  ;;  %2062 = vmatmul.msk.bf16.gmra.mxu1 %vm473_vm1, %v2678_v49  ;;  %v467_v49 = vsel %vm327_vm3, %v462_v46, %v466_v54 }
 0x114   : > { %1868 = vst.msk [vmem:[%s2482_s6 + $0x34] sm:$0xf] %vm1854_vm5, %v1833_v31 }
 0x115   : > { %vm1528_vm7 = vcmp.gt.f32.partialorder %v1460_v38, 0.0  ;;  %v1562_v59 = vmul.f32 0.2, %v1460_v38 }
 0x116   : > { %v1130_v61 = vpop.f32.mrf.mxu2 }
 0x117   : > { %v1193_v62 = vadd.f32 %v1130_v61, %v712_v57  ;;  %v1596_v47 = vsel %vm1528_vm7, %v1460_v38, %v1562_v59  ;;  %v578_v63 = vpop.f32.mrf.mxu0 }
 0x118   : > { %v1800_v60 = vmul.f32 %v1689_v58, %v1596_v47  ;;  %2172 = vmatmul.msk.bf16.gmra.mxu3 %vm473_vm1, %v1254_v50  ;;  %v716_v5 = vpop.f32.mrf.mxu1  ;;  %v715_v0 = vadd.f32 %v714_v42, %v578_v63  ;;  %v1714_v47 = vpop.permute.xlu1 %1713 }
 0x119   : > { %v1423_v6 = vadd.f32 %v1360_v48, %v1193_v62  ;;  %v1709_v48 = vpop.permute.xlu0 %1708 }
 0x11a   : > { %v1834_v51 = vpack.c.bf16 %v1800_v60, %v1800_v60  ;;  %2041 = vmatmul.msk.bf16.gmra.mxu0 %vm473_vm1, %v467_v49 }
 0x11b   : > { %v1461_v53 = vadd.f32 %v2462_v52, %v1423_v6  ;;  %2149 = vmatmul.msk.bf16.gmra.mxu2 %vm473_vm1, %v1024_v1  ;;  %v1363_v2 = vpop.f32.mrf.mxu3 }
 0x11c   : > { %1869 = vst.msk [vmem:[%s2482_s6 + $0x38] sm:$0xf] %vm1854_vm5, %v1834_v51 }
 0x11d   : > { %vm1529_vm2 = vcmp.gt.f32.partialorder %v1461_v53, 0.0  ;;  %v1563_v8 = vmul.f32 0.2, %v1461_v53 }
 0x11e   : > { %v1133_v11 = vpop.f32.mrf.mxu2 }
 0x11f   : > { %v1194_v12 = vadd.f32 %v1133_v11, %v715_v0  ;;  %v1597_v13 = vsel %vm1529_vm2, %v1461_v53, %v1563_v8  ;;  %v580_v14 = vpop.f32.mrf.mxu0 }
 0x120   : > { %v1801_v15 = vmul.f32 %v1694_v7, %v1597_v13  ;;  %v719_v3 = vpop.f32.mrf.mxu1  ;;  %v717_v19 = vadd.f32 %v716_v5, %v580_v14  ;;  %v1719_v13 = vpop.permute.xlu2 %1718 }
 0x121   : > { %v1424_v16 = vadd.f32 %v1363_v2, %v1194_v12 }
 0x122   : > { %v1835_v9 = vpack.c.bf16 %v1801_v15, %v1801_v15 }
 0x123   : > { %v1462_v17 = vadd.f32 %v2462_v52, %v1424_v16  ;;  %v1365_v18 = vpop.f32.mrf.mxu3 }
 0x124   : > { %1870 = vst.msk [vmem:[%s2482_s6 + $0x3c] sm:$0xf] %vm1854_vm5, %v1835_v9 }
 0x125   : > { %vm1530_vm1 = vcmp.gt.f32.partialorder %v1462_v17, 0.0  ;;  %v1564_v24 = vmul.f32 0.2, %v1462_v17 }
 0x126   : > { %v1135_v25 = vpop.f32.mrf.mxu2 }
 0x127   : > { %v1195_v27 = vadd.f32 %v1135_v25, %v717_v19  ;;  %v1598_v4 = vsel %vm1530_vm1, %v1462_v17, %v1564_v24  ;;  %v583_v20 = vpop.f32.mrf.mxu0 }
 0x128   : > { %v1802_v10 = vmul.f32 %v1699_v23, %v1598_v4  ;;  %v721_v26 = vpop.f32.mrf.mxu1  ;;  %v720_v33 = vadd.f32 %v719_v3, %v583_v20  ;;  %v1724_v4 = vpop.permute.xlu0 %1723 }
 0x129   : > { %v1425_v28 = vadd.f32 %v1365_v18, %v1195_v27 }
 0x12a   : > { %v1836_v29 = vpack.c.bf16 %v1802_v10, %v1802_v10 }
 0x12b   : > { %v1463_v32 = vadd.f32 %v2462_v52, %v1425_v28  ;;  %v1368_v34 = vpop.f32.mrf.mxu3 }
 0x12c   : > { %1871 = vst.msk [vmem:[%s2482_s6 + $0x40] sm:$0xf] %vm1854_vm5, %v1836_v29 }
 0x12d   : > { %vm1531_vm3 = vcmp.gt.f32.partialorder %v1463_v32, 0.0  ;;  %v1565_v35 = vmul.f32 0.2, %v1463_v32 }
 0x12e   : > { %v1138_v36 = vpop.f32.mrf.mxu2 }
 0x12f   : > { %v1196_v37 = vadd.f32 %v1138_v36, %v720_v33  ;;  %v1599_v39 = vsel %vm1531_vm3, %v1463_v32, %v1565_v35  ;;  %v585_v30 = vpop.f32.mrf.mxu0 }
 0x130   : > { %v1803_v40 = vmul.f32 %v1704_v21, %v1599_v39  ;;  %v724_v41 = vpop.f32.mrf.mxu1  ;;  %v722_v31 = vadd.f32 %v721_v26, %v585_v30  ;;  %v1729_v39 = vpop.permute.xlu1 %1728 }
 0x131   : > { %v1426_v42 = vadd.f32 %v1368_v34, %v1196_v37 }
 0x132   : > { %v1837_v43 = vpack.c.bf16 %v1803_v40, %v1803_v40 }
 0x133   : > { %v1464_v22 = vadd.f32 %v2462_v52, %v1426_v42  ;;  %v1370_v44 = vpop.f32.mrf.mxu3 }
 0x134   : > { %1872 = vst.msk [vmem:[%s2482_s6 + $0x44] sm:$0xf] %vm1854_vm5, %v1837_v43 }
 0x135   : > { %vm1532_vm8 = vcmp.gt.f32.partialorder %v1464_v22, 0.0  ;;  %v1566_v45 = vmul.f32 0.2, %v1464_v22 }
 0x136   : > { %v1140_v38 = vpop.f32.mrf.mxu2 }
 0x137   : > { %v1600_v46 = vsel %vm1532_vm8, %v1464_v22, %v1566_v45  ;;  %v1197_v54 = vadd.f32 %v1140_v38, %v722_v31  ;;  %v588_v55 = vpop.f32.mrf.mxu0 }
 0x138   : > { %v1804_v56 = vmul.f32 %v1709_v48, %v1600_v46  ;;  %v726_v57 = vpop.f32.mrf.mxu1  ;;  %v725_v61 = vadd.f32 %v724_v41, %v588_v55 }
 0x139   : > { %v1427_v58 = vadd.f32 %v1370_v44, %v1197_v54  ;;  %v1734_v54 = vpop.permute.xlu2 %1733 }
 0x13a   : > { %v1838_v59 = vpack.c.bf16 %v1804_v56, %v1804_v56 }
 0x13b   : > { %v1465_v50 = vadd.f32 %v2462_v52, %v1427_v58  ;;  %v1373_v62 = vpop.f32.mrf.mxu3 }
 0x13c   : > { %1873 = vst.msk [vmem:[%s2482_s6 + $0x48] sm:$0xf] %vm1854_vm5, %v1838_v59 }
 0x13d   : > { %vm1533_vm9 = vcmp.gt.f32.partialorder %v1465_v50, 0.0  ;;  %v1567_v63 = vmul.f32 0.2, %v1465_v50 }
 0x13e   : > { %v1143_v49 = vpop.f32.mrf.mxu2 }
 0x13f   : > { %v1198_v60 = vadd.f32 %v1143_v49, %v725_v61  ;;  %v1601_v1 = vsel %vm1533_vm9, %v1465_v50, %v1567_v63  ;;  %v590_v5 = vpop.f32.mrf.mxu0 }
 0x140   : > { %v1805_v6 = vmul.f32 %v1714_v47, %v1601_v1  ;;  %v729_v51 = vpop.f32.mrf.mxu1  ;;  %v727_v11 = vadd.f32 %v726_v57, %v590_v5  ;;  %v1739_v1 = vpop.permute.xlu0 %1738 }
 0x141   : > { %v1428_v53 = vadd.f32 %v1373_v62, %v1198_v60 }
 0x142   : > { %v1839_v0 = vpack.c.bf16 %v1805_v6, %v1805_v6 }
 0x143   : > { %v1466_v2 = vadd.f32 %v2462_v52, %v1428_v53  ;;  %v1375_v7 = vpop.f32.mrf.mxu3 }
 0x144   : > { %1874 = vst.msk [vmem:[%s2482_s6 + $0x4c] sm:$0xf] %vm1854_vm5, %v1839_v0 }
 0x145   : > { %vm1534_vm10 = vcmp.gt.f32.partialorder %v1466_v2, 0.0  ;;  %v1568_v8 = vmul.f32 0.2, %v1466_v2 }
 0x146   : > { %v1145_v12 = vpop.f32.mrf.mxu2 }
 0x147   : > { %v1602_v14 = vsel %vm1534_vm10, %v1466_v2, %v1568_v8  ;;  %v1199_v15 = vadd.f32 %v1145_v12, %v727_v11  ;;  %v593_v3 = vpop.f32.mrf.mxu0 }
 0x148   : > { %v1806_v16 = vmul.f32 %v1719_v13, %v1602_v14  ;;  %v731_v9 = vpop.f32.mrf.mxu1  ;;  %v730_v23 = vadd.f32 %v729_v51, %v593_v3 }
 0x149   : > { %v1429_v17 = vadd.f32 %v1375_v7, %v1199_v15  ;;  %v1744_v15 = vpop.permute.xlu1 %1743 }
 0x14a   : > { %v1840_v18 = vpack.c.bf16 %v1806_v16, %v1806_v16 }
 0x14b   : > { %v1467_v19 = vadd.f32 %v2462_v52, %v1429_v17  ;;  %v1378_v24 = vpop.f32.mrf.mxu3  ;;  %v2749_v52 = vld [vmem:[%s2794_s2] ss:$0 sm:$0xff] }
 0x14c   : > { %1875 = vst.msk [vmem:[%s2482_s6 + $0x50] sm:$0xf] %vm1854_vm5, %v1840_v18 }
 0x14d   : > { %vm1535_vm11 = vcmp.gt.f32.partialorder %v1467_v19, 0.0  ;;  %v1569_v25 = vmul.f32 0.2, %v1467_v19 }
 0x14e   : > { %v1148_v27 = vpop.f32.mrf.mxu2 }
 0x14f   : > { %v1603_v20 = vsel %vm1535_vm11, %v1467_v19, %v1569_v25  ;;  %v1200_v10 = vadd.f32 %v1148_v27, %v730_v23  ;;  %v595_v26 = vpop.f32.mrf.mxu0 }
 0x150   : > { %v1807_v28 = vmul.f32 %v1724_v4, %v1603_v20  ;;  %v734_v29 = vpop.f32.mrf.mxu1  ;;  %v732_v36 = vadd.f32 %v731_v9, %v595_v26 }
 0x151   : > { %v1430_v32 = vadd.f32 %v1378_v24, %v1200_v10  ;;  %v1749_v10 = vpop.permute.xlu2 %1748 }
 0x152   : > { %v1841_v33 = vpack.c.bf16 %v1807_v28, %v1807_v28 }
 0x153   : > { %v1468_v34 = vadd.f32 %v2749_v52, %v1430_v32  ;;  %v1380_v21 = vpop.f32.mrf.mxu3 }
 0x154   : > { %1876 = vst.msk [vmem:[%s2482_s6 + $0x54] sm:$0xf] %vm1854_vm5, %v1841_v33 }
 0x155   : > { %vm1536_vm12 = vcmp.gt.f32.partialorder %v1468_v34, 0.0  ;;  %v1570_v35 = vmul.f32 0.2, %v1468_v34 }
 0x156   : > { %v1150_v37 = vpop.f32.mrf.mxu2 }
 0x157   : > { %v1604_v30 = vsel %vm1536_vm12, %v1468_v34, %v1570_v35  ;;  %v1201_v40 = vadd.f32 %v1150_v37, %v732_v36  ;;  %v598_v41 = vpop.f32.mrf.mxu0 }
 0x158   : > { %v1808_v42 = vmul.f32 %v1729_v39, %v1604_v30  ;;  %v736_v43 = vpop.f32.mrf.mxu1  ;;  %v735_v31 = vadd.f32 %v734_v29, %v598_v41 }
 0x159   : > { %v1431_v22 = vadd.f32 %v1380_v21, %v1201_v40  ;;  %v1754_v40 = vpop.permute.xlu0 %1753 }
 0x15a   : > { %v1842_v44 = vpack.c.bf16 %v1808_v42, %v1808_v42 }
 0x15b   : > { %v1469_v45 = vadd.f32 %v2749_v52, %v1431_v22  ;;  %v1383_v38 = vpop.f32.mrf.mxu3 }
 0x15c   : > { %1877 = vst.msk [vmem:[%s2482_s6 + $0x58] sm:$0xf] %vm1854_vm5, %v1842_v44 }
 0x15d   : > { %vm1537_vm13 = vcmp.gt.f32.partialorder %v1469_v45, 0.0  ;;  %v1571_v48 = vmul.f32 0.2, %v1469_v45 }
 0x15e   : > { %v1153_v46 = vpop.f32.mrf.mxu2 }
 0x15f   : > { %v1605_v55 = vsel %vm1537_vm13, %v1469_v45, %v1571_v48  ;;  %v1202_v56 = vadd.f32 %v1153_v46, %v735_v31  ;;  %v600_v57 = vpop.f32.mrf.mxu0 }
 0x160   : > { %v1809_v58 = vmul.f32 %v1734_v54, %v1605_v55  ;;  %v739_v59 = vpop.f32.mrf.mxu1  ;;  %v737_v49 = vadd.f32 %v736_v43, %v600_v57 }
 0x161   : > { %v1432_v50 = vadd.f32 %v1383_v38, %v1202_v56  ;;  %v1759_v56 = vpop.permute.xlu1 %1758 }
 0x162   : > { %v1843_v61 = vpack.c.bf16 %v1809_v58, %v1809_v58 }
 0x163   : > { %v1470_v62 = vadd.f32 %v2749_v52, %v1432_v50  ;;  %v1385_v47 = vpop.f32.mrf.mxu3 }
 0x164   : > { %1878 = vst.msk [vmem:[%s2482_s6 + $0x5c] sm:$0xf] %vm1854_vm5, %v1843_v61 }
 0x165   : > { %vm1538_vm14 = vcmp.gt.f32.partialorder %v1470_v62, 0.0  ;;  %v1572_v63 = vmul.f32 0.2, %v1470_v62 }
 0x166   : > { %v1155_v60 = vpop.f32.mrf.mxu2 }
 0x167   : > { %v1606_v5 = vsel %vm1538_vm14, %v1470_v62, %v1572_v63  ;;  %v1203_v6 = vadd.f32 %v1155_v60, %v737_v49  ;;  %v603_v51 = vpop.f32.mrf.mxu0 }
 0x168   : > { %v1810_v53 = vmul.f32 %v1739_v1, %v1606_v5  ;;  %v741_v0 = vpop.f32.mrf.mxu1  ;;  %v740_v11 = vadd.f32 %v739_v59, %v603_v51  ;;  %v1764_v5 = vpop.permute.xlu2 %1763 }
 0x169   : > { %v1433_v2 = vadd.f32 %v1385_v47, %v1203_v6 }
 0x16a   : > { %v1844_v7 = vpack.c.bf16 %v1810_v53, %v1810_v53 }
 0x16b   : > { %v1471_v8 = vadd.f32 %v2749_v52, %v1433_v2  ;;  %v1388_v12 = vpop.f32.mrf.mxu3 }
 0x16c   : > { %1879 = vst.msk [vmem:[%s2482_s6 + $0x60] sm:$0xf] %vm1854_vm5, %v1844_v7 }
 0x16d   : > { %vm1539_vm15 = vcmp.gt.f32.partialorder %v1471_v8, 0.0  ;;  %v1573_v13 = vmul.f32 0.2, %v1471_v8 }
 0x16e   : > { %v1158_v14 = vpop.f32.mrf.mxu2 }
 0x16f   : > { %v1607_v3 = vsel %vm1539_vm15, %v1471_v8, %v1573_v13  ;;  %v1204_v16 = vadd.f32 %v1158_v14, %v740_v11  ;;  %v605_v9 = vpop.f32.mrf.mxu0 }
 0x170   : > { %v1811_v17 = vmul.f32 %v1744_v15, %v1607_v3  ;;  %v744_v23 = vpop.f32.mrf.mxu1  ;;  %v742_v4 = vadd.f32 %v741_v0, %v605_v9  ;;  %v1769_v3 = vpop.permute.xlu0 %1768 }
 0x171   : > { %v1434_v18 = vadd.f32 %v1388_v12, %v1204_v16 }
 0x172   : > { %v1845_v19 = vpack.c.bf16 %v1811_v17, %v1811_v17 }
 0x173   : > { %v1472_v24 = vadd.f32 %v2749_v52, %v1434_v18  ;;  %v1390_v25 = vpop.f32.mrf.mxu3 }
 0x174   : > { %1880 = vst.msk [vmem:[%s2482_s6 + $0x64] sm:$0xf] %vm1854_vm5, %v1845_v19 }
 0x175   : > { %vm1540_vm0 = vcmp.gt.f32.partialorder %v1472_v24, 0.0  ;;  %v1574_v27 = vmul.f32 0.2, %v1472_v24 }
 0x176   : > { %v1160_v20 = vpop.f32.mrf.mxu2 }
 0x177   : > { %v1608_v26 = vsel %vm1540_vm0, %v1472_v24, %v1574_v27  ;;  %v1205_v28 = vadd.f32 %v1160_v20, %v742_v4  ;;  %v608_v29 = vpop.f32.mrf.mxu0 }
 0x178   : > { %v1812_v32 = vmul.f32 %v1749_v10, %v1608_v26  ;;  %v745_v35 = vadd.f32 %v744_v23, %v608_v29  ;;  %v746_v37 = vpop.f32.mrf.mxu1  ;;  %v1774_v26 = vpop.permute.xlu1 %1773 }
 0x179   : > { %v1435_v33 = vadd.f32 %v1390_v25, %v1205_v28 }
 0x17a   : > { %v1846_v34 = vpack.c.bf16 %v1812_v32, %v1812_v32 }
 0x17b   : > { %v1473_v21 = vadd.f32 %v2749_v52, %v1435_v33  ;;  %v1393_v36 = vpop.f32.mrf.mxu3 }
 0x17c   : > { %1881 = vst.msk [vmem:[%s2482_s6 + $0x68] sm:$0xf] %vm1854_vm5, %v1846_v34 }
 0x17d   : > { %vm1541_vm4 = vcmp.gt.f32.partialorder %v1473_v21, 0.0  ;;  %v1575_v39 = vmul.f32 0.2, %v1473_v21 }
 0x17e   : > { %v1163_v30 = vpop.f32.mrf.mxu2 }
 0x17f   : > { %v1609_v41 = vsel %vm1541_vm4, %v1473_v21, %v1575_v39  ;;  %v1206_v42 = vadd.f32 %v1163_v30, %v745_v35  ;;  %v610_v43 = vpop.f32.mrf.mxu0 }
 0x180   : > { %v1813_v22 = vmul.f32 %v1754_v40, %v1609_v41  ;;  %v747_v46 = vadd.f32 %v746_v37, %v610_v43  ;;  %v749_v54 = vpop.f32.mrf.mxu1  ;;  %v1779_v40 = vpop.permute.xlu2 %1778 }
 0x181   : > { %v1436_v44 = vadd.f32 %v1393_v36, %v1206_v42 }
 0x182   : > { %v1847_v45 = vpack.c.bf16 %v1813_v22, %v1813_v22 }
 0x183   : > { %v1474_v31 = vadd.f32 %v2749_v52, %v1436_v44  ;;  %v1395_v38 = vpop.f32.mrf.mxu3 }
 0x184   : > { %1882 = vst.msk [vmem:[%s2482_s6 + $0x6c] sm:$0xf] %vm1854_vm5, %v1847_v45 }
 0x185   : > { %vm1542_vm6 = vcmp.gt.f32.partialorder %v1474_v31, 0.0  ;;  %v1576_v48 = vmul.f32 0.2, %v1474_v31 }
 0x186   : > { %v1165_v55 = vpop.f32.mrf.mxu2 }
 0x187   : > { %v1610_v57 = vsel %vm1542_vm6, %v1474_v31, %v1576_v48  ;;  %v1207_v58 = vadd.f32 %v1165_v55, %v747_v46  ;;  %v613_v59 = vpop.f32.mrf.mxu0  ;;  %v1784_v48 = vpop.permute.xlu0 %1783 }
 0x188   : > { %v1814_v50 = vmul.f32 %v1759_v56, %v1610_v57  ;;  %v750_v63 = vadd.f32 %v749_v54, %v613_v59  ;;  %v751_v2 = vpop.f32.mrf.mxu1 }
 0x189   : > { %v1437_v61 = vadd.f32 %v1395_v38, %v1207_v58 }
 0x18a   : > { %v1848_v62 = vpack.c.bf16 %v1814_v50, %v1814_v50 }
 0x18b   : > { %v1475_v47 = vadd.f32 %v2749_v52, %v1437_v61  ;;  %v1398_v49 = vpop.f32.mrf.mxu3 }
 0x18c   : > { %1883 = vst.msk [vmem:[%s2482_s6 + $0x70] sm:$0xf] %vm1854_vm5, %v1848_v62 }
 0x18d   : > { %vm1543_vm7 = vcmp.gt.f32.partialorder %v1475_v47, 0.0  ;;  %v1577_v60 = vmul.f32 0.2, %v1475_v47 }
 0x18e   : > { %v1168_v1 = vpop.f32.mrf.mxu2 }
 0x18f   : > { %v1611_v6 = vsel %vm1543_vm7, %v1475_v47, %v1577_v60  ;;  %v1208_v51 = vadd.f32 %v1168_v1, %v750_v63  ;;  %v615_v53 = vpop.f32.mrf.mxu0 }
 0x190   : > { %v1815_v0 = vmul.f32 %v1764_v5, %v1611_v6  ;;  %v752_v14 = vadd.f32 %v751_v2, %v615_v53  ;;  %v754_v24 = vpop.f32.mrf.mxu1 }
 0x191   : > { %v1438_v7 = vadd.f32 %v1398_v49, %v1208_v51 }
 0x192   : > { %v1849_v8 = vpack.c.bf16 %v1815_v0, %v1815_v0 }
 0x193   : > { %v1476_v11 = vadd.f32 %v2749_v52, %v1438_v7  ;;  %v1400_v12 = vpop.f32.mrf.mxu3 }
 0x194   : > { %1884 = vst.msk [vmem:[%s2482_s6 + $0x74] sm:$0xf] %vm1854_vm5, %v1849_v8 }
 0x195   : > { %vm1544_vm2 = vcmp.gt.f32.partialorder %v1476_v11, 0.0  ;;  %v1578_v13 = vmul.f32 0.2, %v1476_v11 }
 0x196   : > { %v1170_v15 = vpop.f32.mrf.mxu2 }
 0x197   : > { %v1612_v16 = vsel %vm1544_vm2, %v1476_v11, %v1578_v13  ;;  %v1209_v9 = vadd.f32 %v1170_v15, %v752_v14  ;;  %v618_v18 = vpop.f32.mrf.mxu0 }
 0x198   : > { %v1816_v17 = vmul.f32 %v1769_v3, %v1612_v16  ;;  %v755_v27 = vadd.f32 %v754_v24, %v618_v18  ;;  %v756_v36 = vpop.f32.mrf.mxu1 }
 0x199   : > { %v1439_v19 = vadd.f32 %v1400_v12, %v1209_v9 }
 0x19a   : > { %v1850_v23 = vpack.c.bf16 %v1816_v17, %v1816_v17 }
 0x19b   : > { %v1477_v25 = vadd.f32 %v2749_v52, %v1439_v19  ;;  %v1403_v20 = vpop.f32.mrf.mxu3 }
 0x19c   : > { %1885 = vst.msk [vmem:[%s2482_s6 + $0x78] sm:$0xf] %vm1854_vm5, %v1850_v23 }
 0x19d   : > { %vm1545_vm1 = vcmp.gt.f32.partialorder %v1477_v25, 0.0  ;;  %v1579_v4 = vmul.f32 0.2, %v1477_v25 }
 0x19e   : > { %v1173_v10 = vpop.f32.mrf.mxu2 }
 0x19f   : > { %v1613_v28 = vsel %vm1545_vm1, %v1477_v25, %v1579_v4  ;;  %v1210_v29 = vadd.f32 %v1173_v10, %v755_v27  ;;  %v620_v21 = vpop.f32.mrf.mxu0 }
 0x1a0   : > { %v1817_v32 = vmul.f32 %v1774_v26, %v1613_v28  ;;  %v757_v39 = vadd.f32 %v756_v36, %v620_v21 }
 0x1a1   : > { %v1440_v33 = vadd.f32 %v1403_v20, %v1210_v29 }
 0x1a2   : > { %v1851_v34 = vpack.c.bf16 %v1817_v32, %v1817_v32 }
 0x1a3   : > { %v1478_v35 = vadd.f32 %v2749_v52, %v1440_v33  ;;  %v1405_v22 = vpop.f32.mrf.mxu3 }
 0x1a4   : > { %1886 = vst.msk [vmem:[%s2482_s6 + $0x7c] sm:$0xf] %vm1854_vm5, %v1851_v34 }
 0x1a5   : > { %vm1546_vm3 = vcmp.gt.f32.partialorder %v1478_v35, 0.0  ;;  %v1580_v37 = vmul.f32 0.2, %v1478_v35 }
 0x1a6   : > { %v1175_v30 = vpop.f32.mrf.mxu2 }
 0x1a7   : > { %v1614_v41 = vsel %vm1546_vm3, %v1478_v35, %v1580_v37  ;;  %v1211_v42 = vadd.f32 %v1175_v30, %v757_v39 }
 0x1a8   : > { %v1818_v43 = vmul.f32 %v1779_v40, %v1614_v41 }
 0x1a9   : > { %v1441_v44 = vadd.f32 %v1405_v22, %v1211_v42 }
 0x1aa   : > { %v1852_v45 = vpack.c.bf16 %v1818_v43, %v1818_v43 }
 0x1ab   : > { %v1479_v31 = vadd.f32 %v2749_v52, %v1441_v44 }
 0x1ac   : > { %1887 = vst.msk [vmem:[%s2482_s6 + $0x80] sm:$0xf] %vm1854_vm5, %v1852_v45 }
 0x1ad   : > { %vm1547_vm8 = vcmp.gt.f32.partialorder %v1479_v31, 0.0  ;;  %v1581_v38 = vmul.f32 0.2, %v1479_v31 }
 0x1af   : > { %v1615_v46 = vsel %vm1547_vm8, %v1479_v31, %v1581_v38 }
 0x1b0   : > { %v1819_v54 = vmul.f32 %v1784_v48, %v1615_v46 }
 0x1b2   : > { %v1853_v55 = vpack.c.bf16 %v1819_v54, %v1819_v54 }
 0x1b4   : > { %1888 = vst.msk [vmem:[%s2482_s6 + $0x84] sm:$0xf] %vm1854_vm5, %v1853_v55 }
 0x1b5 PF: > { %s14_s15 = sadd.s32 1, %s2242_s15  }
 0x1b6   : > { %p11_p4 = scmp.ge.s32.totalorder %s14_s15, 4  }
 0x1b8   :  { %13 = sbr.rel (!%p11_p4) target bundleno = 1 (0x1), region = 69 }

</bundles_post_ra>
